<compile_context>
chip_gen: v7x
topology: tpu7x:2x2x1
jax: 0.10.0
libtpu: 0.0.40
codegen_flags: <defaults>
</compile_context>

<pallas_src>
import functools

import jax
import jax.numpy as jnp
from jax.experimental import pallas as pl
from jax.experimental.pallas import tpu as pltpu


_VMEM_LIMIT_BYTES = 32 * 1024 * 1024   # safe on v5e/v6e/v7x (raiseable on v5e/v6e)
_LANE = 128
_SUBLANE = 8
_FUSED_MAX_NODES = 2048                 # adj bf16 <= 8 MiB -> whole fwd fits VMEM


def _round_up(v, m):
    return (v + m - 1) // m * m


def _choose_tile(n, tile):
    """Row/K tile satisfying the (8,128) block rules; returns (tile, padded_n)."""
    if n <= tile:
        t = _round_up(n, _SUBLANE)          # single full-extent block
        return t, t
    t = _round_up(tile, _LANE)              # partial blocks must be 128-divisible
    return t, _round_up(n, t)


def _pad2(a, rows, cols):
    return jnp.pad(a, ((0, rows - a.shape[0]), (0, cols - a.shape[1])))


# ----------------------------------------------------------------------------
# PRIMARY PATH: fully fused forward (A_hat resident in VMEM, single launch)
# ----------------------------------------------------------------------------
def _fused_kernel(adj_ref, x_ref, w1_ref, b1_ref, w2_ref, b2_ref,
                  wfc_ref, bfc_ref, probs_ref, nreps_ref, grep_ref, *, n_valid):
    adj = adj_ref[...]                                          # bf16, resident
    bf16 = adj.dtype

    # conv1: h1 = relu(A_hat @ (X W1) + b1)
    xw1 = jnp.dot(x_ref[...], w1_ref[...], preferred_element_type=jnp.float32)
    h1 = jnp.dot(adj, xw1.astype(bf16), preferred_element_type=jnp.float32)
    h1 = jnp.maximum(h1 + b1_ref[...], 0.0).astype(bf16)

    # conv2: nreps = relu(A_hat @ (H1 W2) + b2)
    xw2 = jnp.dot(h1, w2_ref[...], preferred_element_type=jnp.float32)
    nreps = jnp.dot(adj, xw2.astype(bf16), preferred_element_type=jnp.float32)
    nreps = jnp.maximum(nreps + b2_ref[...], 0.0)

    # zero padded node rows (keeps the mean exact and the output clean)
    rows = jax.lax.broadcasted_iota(jnp.int32, nreps.shape, 0)
    nreps = jnp.where(rows < n_valid, nreps, 0.0)
    nreps_ref[...] = nreps

    # readout: mean over nodes -> (eval-mode dropout = identity) -> fc -> softmax
    g_rep = jnp.sum(nreps, axis=0, keepdims=True) * (1.0 / n_valid)
    grep_ref[...] = g_rep
    logits = jnp.dot(g_rep, wfc_ref[...],
                     preferred_element_type=jnp.float32) + bfc_ref[...]
    m = jnp.max(logits, axis=1, keepdims=True)
    e = jnp.exp(logits - m)
    probs_ref[...] = e / jnp.sum(e, axis=1, keepdims=True)       # exact normalize


def _fused_forward(adj_b, x_b, w1_b, b1_f, w2_b, b2_f, wfc_f, bfc_f, *, n_valid):
    np_ = adj_b.shape[0]
    h2p = w2_b.shape[1]
    c = wfc_f.shape[1]
    kernel = functools.partial(_fused_kernel, n_valid=n_valid)
    return pl.pallas_call(
        kernel,
        out_shape=(jax.ShapeDtypeStruct((1, c), jnp.float32),      # probs
                   jax.ShapeDtypeStruct((np_, h2p), jnp.float32),  # nreps (padded)
                   jax.ShapeDtypeStruct((1, h2p), jnp.float32)),   # g_rep (padded)
        compiler_params=pltpu.CompilerParams(
            vmem_limit_bytes=_VMEM_LIMIT_BYTES),
    )(adj_b, x_b, w1_b, b1_f, w2_b, b2_f, wfc_f, bfc_f)


# ----------------------------------------------------------------------------
# TILED FALLBACK, kernel 1: XW precompute (row-parallel, hoisted out of conv)
# ----------------------------------------------------------------------------
def _xw_kernel(x_ref, w_ref, out_ref):
    out_ref[...] = jnp.dot(x_ref[...], w_ref[...],
                           preferred_element_type=jnp.float32).astype(out_ref.dtype)


def _xw_matmul(x_b, w_b, *, tile):
    np_, dp = x_b.shape
    hp = w_b.shape[1]
    return pl.pallas_call(
        _xw_kernel,
        out_shape=jax.ShapeDtypeStruct((np_, hp), jnp.bfloat16),
        grid=(np_ // tile,),
        in_specs=[pl.BlockSpec((tile, dp), lambda i: (i, 0)),
                  pl.BlockSpec((dp, hp), lambda i: (0, 0))],
        out_specs=pl.BlockSpec((tile, hp), lambda i: (i, 0)),
        compiler_params=pltpu.CompilerParams(
            dimension_semantics=("parallel",),
            vmem_limit_bytes=_VMEM_LIMIT_BYTES),
    )(x_b, w_b)


# ----------------------------------------------------------------------------
# TILED FALLBACK, kernel 2: conv1   h1 = relu(A_hat @ XW1 + b1)  (bf16 out)
# ----------------------------------------------------------------------------
def _conv1_kernel(adj_ref, xw_ref, b_ref, out_ref, acc_ref):
    k = pl.program_id(1)                    # hoisted out of pl.when bodies
    nk = pl.num_programs(1)

    @pl.when(k == 0)
    def _():
        acc_ref[...] = jnp.zeros_like(acc_ref)

    acc_ref[...] += jnp.dot(adj_ref[...], xw_ref[...],
                            preferred_element_type=jnp.float32)

    @pl.when(k == nk - 1)
    def _():
        out_ref[...] = jnp.maximum(acc_ref[...] + b_ref[...], 0.0).astype(out_ref.dtype)


def _conv1(adj_b, xw_b, b_f, *, tile):
    np_ = adj_b.shape[0]
    hp = xw_b.shape[1]
    gi = gk = np_ // tile
    return pl.pallas_call(
        _conv1_kernel,
        out_shape=jax.ShapeDtypeStruct((np_, hp), jnp.bfloat16),
        grid=(gi, gk),
        in_specs=[pl.BlockSpec((tile, tile), lambda i, k: (i, k)),   # A_hat tile
                  pl.BlockSpec((tile, hp), lambda i, k: (k, 0)),     # XW1 k-rows
                  pl.BlockSpec((1, hp), lambda i, k: (0, 0))],       # bias
        out_specs=pl.BlockSpec((tile, hp), lambda i, k: (i, 0)),
        scratch_shapes=[pltpu.VMEM((tile, hp), jnp.float32)],
        compiler_params=pltpu.CompilerParams(
            dimension_semantics=("parallel", "arbitrary"),
            vmem_limit_bytes=_VMEM_LIMIT_BYTES),
    )(adj_b, xw_b, b_f)


# ----------------------------------------------------------------------------
# TILED FALLBACK, kernel 3: conv2 (f32, accumulate directly in out_ref) plus
# per-row-block column partial sums for the readout (no nreps HBM re-read).
# ----------------------------------------------------------------------------
def _conv2_kernel(adj_ref, xw_ref, b_ref, out_ref, psum_ref, *, n_valid, tile):
    i = pl.program_id(0)                    # hoisted out of pl.when bodies
    k = pl.program_id(1)
    nk = pl.num_programs(1)
    row0 = i * tile

    @pl.when(k == 0)
    def _():
        out_ref[...] = jnp.zeros_like(out_ref)

    out_ref[...] += jnp.dot(adj_ref[...], xw_ref[...],
                            preferred_element_type=jnp.float32)

    @pl.when(k == nk - 1)
    def _():
        h = jnp.maximum(out_ref[...] + b_ref[...], 0.0)
        rows = jax.lax.broadcasted_iota(jnp.int32, h.shape, 0) + row0
        h = jnp.where(rows < n_valid, h, 0.0)          # zero padded node rows
        out_ref[...] = h
        colsum = jnp.sum(h, axis=0, keepdims=True)      # (1, h2p)
        rows8 = jax.lax.broadcasted_iota(jnp.int32, psum_ref.shape, 0)
        psum_ref[...] = jnp.where(rows8 == 0, colsum, 0.0)


def _conv2(adj_b, xw_b, b_f, *, tile, n_valid):
    np_ = adj_b.shape[0]
    h2p = xw_b.shape[1]
    gi = gk = np_ // tile
    kernel = functools.partial(_conv2_kernel, n_valid=n_valid, tile=tile)
    return pl.pallas_call(
        kernel,
        out_shape=(jax.ShapeDtypeStruct((np_, h2p), jnp.float32),     # nreps
                   jax.ShapeDtypeStruct((gi * 8, h2p), jnp.float32)), # partial sums
        grid=(gi, gk),
        in_specs=[pl.BlockSpec((tile, tile), lambda i, k: (i, k)),
                  pl.BlockSpec((tile, h2p), lambda i, k: (k, 0)),
                  pl.BlockSpec((1, h2p), lambda i, k: (0, 0))],
        out_specs=(pl.BlockSpec((tile, h2p), lambda i, k: (i, 0)),
                   pl.BlockSpec((8, h2p), lambda i, k: (i, 0))),
        compiler_params=pltpu.CompilerParams(
            dimension_semantics=("parallel", "arbitrary"),
            vmem_limit_bytes=_VMEM_LIMIT_BYTES),
    )(adj_b, xw_b, b_f)


# ----------------------------------------------------------------------------
# TILED FALLBACK, kernel 4: finalize  (sum partials -> mean -> fc -> softmax)
# ----------------------------------------------------------------------------
def _finalize_kernel(psums_ref, wfc_ref, bfc_ref, probs_ref, grep_ref, *, inv_n):
    total = jnp.sum(psums_ref[...], axis=0, keepdims=True)
    g_rep = total * inv_n
    grep_ref[...] = g_rep
    logits = jnp.dot(g_rep, wfc_ref[...],
                     preferred_element_type=jnp.float32) + bfc_ref[...]
    m = jnp.max(logits, axis=1, keepdims=True)
    e = jnp.exp(logits - m)
    probs_ref[...] = e / jnp.sum(e, axis=1, keepdims=True)          # exact


def _finalize(psums, wfc_f, bfc_f, *, n_valid):
    h2p = psums.shape[1]
    c = wfc_f.shape[1]
    kernel = functools.partial(_finalize_kernel, inv_n=1.0 / n_valid)
    return pl.pallas_call(
        kernel,
        out_shape=(jax.ShapeDtypeStruct((1, c), jnp.float32),
                   jax.ShapeDtypeStruct((1, h2p), jnp.float32)),
        compiler_params=pltpu.CompilerParams(
            vmem_limit_bytes=_VMEM_LIMIT_BYTES),
    )(psums, wfc_f, bfc_f)


# ----------------------------------------------------------------------------
# Full forward pass
# ----------------------------------------------------------------------------
@functools.partial(jax.jit, static_argnames=("tile", "force_tiled"))
def gmapad_gcn_forward(adj_hat, x, w1, b1, w2, b2, wfc, bfc, *,
                       tile=512, force_tiled=False):
    n, d = x.shape
    h = w1.shape[1]
    h2 = w2.shape[1]

    dp = _round_up(d, _LANE)
    hp = _round_up(h, _LANE)
    h2p = _round_up(h2, _LANE)

    bf16, f32 = jnp.bfloat16, jnp.float32
    w1_b = _pad2(w1, dp, hp).astype(bf16)
    b1_f = _pad2(b1, 1, hp).astype(f32)
    w2_b = _pad2(w2, hp, h2p).astype(bf16)
    b2_f = _pad2(b2, 1, h2p).astype(f32)
    wfc_f = _pad2(wfc, h2p, wfc.shape[1]).astype(f32)
    bfc_f = bfc.astype(f32)

    if (not force_tiled) and n <= _FUSED_MAX_NODES:
        # Fused path: A_hat resident in VMEM, single launch, no HBM round-trips.
        # (Single TensorCore; for small N launch overhead dominates anyway.)
        np_ = _round_up(n, _LANE)
        adj_b = _pad2(adj_hat, np_, np_).astype(bf16)
        x_b = _pad2(x, np_, dp).astype(bf16)
        probs, nreps_p, grep_p = _fused_forward(
            adj_b, x_b, w1_b, b1_f, w2_b, b2_f, wfc_f, bfc_f, n_valid=n)
    else:
        # Tiled path: row axis "parallel" (v7x megacore), K reduction last.
        t, np_ = _choose_tile(n, tile)
        adj_b = _pad2(adj_hat, np_, np_).astype(bf16)
        x_b = _pad2(x, np_, dp).astype(bf16)
        xw1 = _xw_matmul(x_b, w1_b, tile=t)                 # X @ W1   (hoisted)
        h1 = _conv1(adj_b, xw1, b1_f, tile=t)               # relu(A XW1 + b1), bf16
        xw2 = _xw_matmul(h1, w2_b, tile=t)                  # H1 @ W2  (hoisted)
        nreps_p, psums = _conv2(adj_b, xw2, b2_f, tile=t, n_valid=n)
        probs, grep_p = _finalize(psums, wfc_f, bfc_f, n_valid=n)

    return probs, nreps_p[:n, :h2], grep_p[:, :h2]


# ----------------------------------------------------------------------------
# Plain-JAX glue: normalized adjacency from edge_index (PyG gcn_norm semantics)
# ----------------------------------------------------------------------------
def build_gcn_adj(edge_index, num_nodes):
    src, dst = edge_index[0], edge_index[1]
    # propagation: out[dst] += norm * x[src]  =>  A[dst, src]; duplicate edges
    # accumulate (as in PyG message passing).
    a = jnp.zeros((num_nodes, num_nodes), jnp.float32).at[dst, src].add(1.0)
    # add_remaining_self_loops: only for nodes that do not already have one.
    diag = jnp.diagonal(a)
    a = a + jnp.diag(jnp.where(diag == 0.0, 1.0, 0.0))
    deg = jnp.sum(a, axis=1)
    dinv = jnp.where(deg > 0, jax.lax.rsqrt(deg), 0.0)
    return dinv[:, None] * a * dinv[None, :]


# ----------------------------------------------------------------------------
# Driver
# ----------------------------------------------------------------------------
if __name__ == "__main__":
    num_nodes = 200
    input_dim = 32
    hidden_channels = 32
    num_classes = 2
    h2 = hidden_channels // 2

    key = jax.random.PRNGKey(0)
    kx, kw1, kw2, kwfc, kbfc = jax.random.split(key, 5)

    # node features
    x = jax.random.normal(kx, (num_nodes, input_dim), jnp.float32)

    # deterministic edge_index: bidirectional ring + chord (+7)
    idx = jnp.arange(num_nodes)
    src = jnp.concatenate([idx, (idx + 1) % num_nodes, idx, (idx + 7) % num_nodes])
    dst = jnp.concatenate([(idx + 1) % num_nodes, idx, (idx + 7) % num_nodes, idx])
    edge_index = jnp.stack([src, dst], axis=0)               # [2, E]

    def glorot(k, shape):
        s = jnp.sqrt(6.0 / (shape[0] + shape[1]))
        return jax.random.uniform(k, shape, jnp.float32, -s, s)

    w1 = glorot(kw1, (input_dim, hidden_channels))
    b1 = jnp.zeros((1, hidden_channels), jnp.float32)
    w2 = glorot(kw2, (hidden_channels, h2))
    b2 = jnp.zeros((1, h2), jnp.float32)
    wfc = glorot(kwfc, (h2, num_classes))
    bfc = jax.random.uniform(kbfc, (1, num_classes), jnp.float32,
                             -1.0 / jnp.sqrt(h2), 1.0 / jnp.sqrt(h2))

    adj_hat = build_gcn_adj(edge_index, num_nodes)

    # pure-JAX reference mimicking kernel precision (bf16 MXU inputs, f32 accum,
    # bf16 h1/XW storage); readout/fc/softmax in f32.
    def bf(a):
        return a.astype(jnp.bfloat16).astype(jnp.float32)

    adj_r, x_r, w1_r, w2_r = bf(adj_hat), bf(x), bf(w1), bf(w2)
    h1_ref = bf(jnp.maximum(adj_r @ bf(x_r @ w1_r) + b1, 0.0))
    nr_ref = jnp.maximum(adj_r @ bf(h1_ref @ w2_r) + b2, 0.0)
    gr_ref = jnp.mean(nr_ref, axis=0, keepdims=True)
    pr_ref = jax.nn.softmax(gr_ref @ wfc + bfc, axis=1)

    def check(probs, n_reps, g_rep, tag):
        assert n_reps.shape == (num_nodes, h2), tag
        assert g_rep.shape == (1, h2), tag
        assert probs.shape == (1, num_classes), tag
        assert jnp.allclose(n_reps, nr_ref, atol=5e-3, rtol=5e-3), tag
        assert jnp.allclose(g_rep, gr_ref, atol=5e-3, rtol=5e-3), tag
        assert jnp.allclose(probs, pr_ref, atol=1e-2, rtol=1e-2), tag
        assert abs(float(jnp.sum(probs)) - 1.0) < 1e-4, tag   # exact softmax

    # 1) fused single-kernel path (default for small/medium graphs)
    out_fused = gmapad_gcn_forward(adj_hat, x, w1, b1, w2, b2, wfc, bfc)
    jax.block_until_ready(out_fused)
    check(*out_fused, tag="fused")

    # 2) tiled fallback path, forced with tile=128 so the conv grid is (2, 2)
    #    (row axis "parallel" -> both v7x TensorCores usable).
    out_tiled = gmapad_gcn_forward(adj_hat, x, w1, b1, w2, b2, wfc, bfc,
                                   tile=128, force_tiled=True)
    jax.block_until_ready(out_tiled)
    check(*out_tiled, tag="tiled")

    print("KERNEL_OK")
</pallas_src>

<mosaic_0001>
module attributes {stable_mosaic.version = 11 : i64} {
  func.func @_fused_kernel(%arg0: memref<256x256xbf16, #tpu.memory_space<vmem>>, %arg1: memref<256x128xbf16, #tpu.memory_space<vmem>>, %arg2: memref<128x128xbf16, #tpu.memory_space<vmem>>, %arg3: memref<1x128xf32, #tpu.memory_space<vmem>>, %arg4: memref<128x128xbf16, #tpu.memory_space<vmem>>, %arg5: memref<1x128xf32, #tpu.memory_space<vmem>>, %arg6: memref<128x2xf32, #tpu.memory_space<vmem>>, %arg7: memref<1x2xf32, #tpu.memory_space<vmem>>, %arg8: memref<1x2xf32, #tpu.memory_space<vmem>>, %arg9: memref<256x128xf32, #tpu.memory_space<vmem>>, %arg10: memref<1x128xf32, #tpu.memory_space<vmem>>) attributes {dimension_semantics = [], scalar_prefetch = 0 : i64, scratch_operands = 0 : i64, tpu.core_type = #tpu.core_type<tc>} {
    %c0 = arith.constant 0 : index
    %c0_0 = arith.constant 0 : index
    %0 = vector.load %arg0[%c0, %c0_0] : memref<256x256xbf16, #tpu.memory_space<vmem>>, vector<256x256xbf16>
    %c0_1 = arith.constant 0 : index
    %c0_2 = arith.constant 0 : index
    %1 = vector.load %arg1[%c0_1, %c0_2] : memref<256x128xbf16, #tpu.memory_space<vmem>>, vector<256x128xbf16>
    %c0_3 = arith.constant 0 : index
    %c0_4 = arith.constant 0 : index
    %2 = vector.load %arg2[%c0_3, %c0_4] : memref<128x128xbf16, #tpu.memory_space<vmem>>, vector<128x128xbf16>
    %cst = arith.constant dense<0.000000e+00> : vector<256x128xf32>
    %3 = tpu.matmul %1, %2, %cst {dimension_numbers = #tpu.dot_dimension_numbers<[1], [0], [0], [1], [0, 0, 1, 1], [], []>} : vector<256x128xbf16>, vector<128x128xbf16>, vector<256x128xf32> -> vector<256x128xf32>
    %4 = arith.truncf %3 : vector<256x128xf32> to vector<256x128xbf16>
    %cst_5 = arith.constant dense<0.000000e+00> : vector<256x128xf32>
    %5 = tpu.matmul %0, %4, %cst_5 {dimension_numbers = #tpu.dot_dimension_numbers<[1], [0], [0], [1], [0, 0, 1, 1], [], []>} : vector<256x256xbf16>, vector<256x128xbf16>, vector<256x128xf32> -> vector<256x128xf32>
    %c0_6 = arith.constant 0 : index
    %c0_7 = arith.constant 0 : index
    %6 = vector.load %arg3[%c0_6, %c0_7] : memref<1x128xf32, #tpu.memory_space<vmem>>, vector<1x128xf32>
    %7 = vector.broadcast %6 : vector<1x128xf32> to vector<256x128xf32>
    %8 = arith.addf %5, %7 : vector<256x128xf32>
    %cst_8 = arith.constant 0.000000e+00 : f32
    %9 = vector.broadcast %cst_8 : f32 to vector<256x128xf32>
    %10 = arith.maximumf %8, %9 : vector<256x128xf32>
    %11 = arith.truncf %10 : vector<256x128xf32> to vector<256x128xbf16>
    %c0_9 = arith.constant 0 : index
    %c0_10 = arith.constant 0 : index
    %12 = vector.load %arg4[%c0_9, %c0_10] : memref<128x128xbf16, #tpu.memory_space<vmem>>, vector<128x128xbf16>
    %cst_11 = arith.constant dense<0.000000e+00> : vector<256x128xf32>
    %13 = tpu.matmul %11, %12, %cst_11 {dimension_numbers = #tpu.dot_dimension_numbers<[1], [0], [0], [1], [0, 0, 1, 1], [], []>} : vector<256x128xbf16>, vector<128x128xbf16>, vector<256x128xf32> -> vector<256x128xf32>
    %14 = arith.truncf %13 : vector<256x128xf32> to vector<256x128xbf16>
    %cst_12 = arith.constant dense<0.000000e+00> : vector<256x128xf32>
    %15 = tpu.matmul %0, %14, %cst_12 {dimension_numbers = #tpu.dot_dimension_numbers<[1], [0], [0], [1], [0, 0, 1, 1], [], []>} : vector<256x256xbf16>, vector<256x128xbf16>, vector<256x128xf32> -> vector<256x128xf32>
    %c0_13 = arith.constant 0 : index
    %c0_14 = arith.constant 0 : index
    %16 = vector.load %arg5[%c0_13, %c0_14] : memref<1x128xf32, #tpu.memory_space<vmem>>, vector<1x128xf32>
    %17 = vector.broadcast %16 : vector<1x128xf32> to vector<256x128xf32>
    %18 = arith.addf %15, %17 : vector<256x128xf32>
    %cst_15 = arith.constant 0.000000e+00 : f32
    %19 = vector.broadcast %cst_15 : f32 to vector<256x128xf32>
    %20 = arith.maximumf %18, %19 : vector<256x128xf32>
    %21 = tpu.iota {dimensions = array<i32: 0>} : vector<256x128xi32>
    %c200_i32 = arith.constant 200 : i32
    %22 = vector.broadcast %c200_i32 : i32 to vector<256x128xi32>
    %23 = arith.cmpi slt, %21, %22 : vector<256x128xi32>
    %cst_16 = arith.constant 0.000000e+00 : f32
    %24 = vector.broadcast %cst_16 : f32 to vector<256x128xf32>
    %25 = arith.select %23, %20, %24 : vector<256x128xi1>, vector<256x128xf32>
    %c0_17 = arith.constant 0 : index
    %c0_18 = arith.constant 0 : index
    %26 = vector.load %arg9[%c0_17, %c0_18] : memref<256x128xf32, #tpu.memory_space<vmem>>, vector<256x128xf32>
    tpu.vector_store %arg9[%c0_17, %c0_18], %25 {strides = array<i32>} : memref<256x128xf32, #tpu.memory_space<vmem>>, vector<256x128xf32>,
    %cst_19 = arith.constant dense<0.000000e+00> : vector<128xf32>
    %27 = vector.multi_reduction <add>, %25, %cst_19 [0] : vector<256x128xf32> to vector<128xf32>
    %28 = vector.shape_cast %27 : vector<128xf32> to vector<1x128xf32>
    %cst_20 = arith.constant 5.000000e-03 : f32
    %29 = vector.broadcast %cst_20 : f32 to vector<1x128xf32>
    %30 = arith.mulf %28, %29 : vector<1x128xf32>
    %c0_21 = arith.constant 0 : index
    %c0_22 = arith.constant 0 : index
    %31 = vector.load %arg10[%c0_21, %c0_22] : memref<1x128xf32, #tpu.memory_space<vmem>>, vector<1x128xf32>
    tpu.vector_store %arg10[%c0_21, %c0_22], %30 {strides = array<i32>} : memref<1x128xf32, #tpu.memory_space<vmem>>, vector<1x128xf32>,
    %c0_23 = arith.constant 0 : index
    %c0_24 = arith.constant 0 : index
    %32 = vector.load %arg6[%c0_23, %c0_24] : memref<128x2xf32, #tpu.memory_space<vmem>>, vector<128x2xf32>
    %cst_25 = arith.constant dense<0.000000e+00> : vector<1x2xf32>
    %33 = tpu.matmul %30, %32, %cst_25 {dimension_numbers = #tpu.dot_dimension_numbers<[1], [0], [0], [1], [0, 0, 1, 1], [], []>} : vector<1x128xf32>, vector<128x2xf32>, vector<1x2xf32> -> vector<1x2xf32>
    %c0_26 = arith.constant 0 : index
    %c0_27 = arith.constant 0 : index
    %34 = vector.load %arg7[%c0_26, %c0_27] : memref<1x2xf32, #tpu.memory_space<vmem>>, vector<1x2xf32>
    %35 = arith.addf %33, %34 : vector<1x2xf32>
    %cst_28 = arith.constant dense<0xFF800000> : vector<1xf32>
    %36 = vector.multi_reduction <maximumf>, %35, %cst_28 [1] : vector<1x2xf32> to vector<1xf32>
    %37 = vector.shape_cast %36 : vector<1xf32> to vector<1x1xf32>
    %38 = vector.broadcast %37 : vector<1x1xf32> to vector<1x2xf32>
    %39 = arith.subf %35, %38 : vector<1x2xf32>
    %40 = math.exp %39 : vector<1x2xf32>
    %cst_29 = arith.constant dense<0.000000e+00> : vector<1xf32>
    %41 = vector.multi_reduction <add>, %40, %cst_29 [1] : vector<1x2xf32> to vector<1xf32>
    %42 = vector.shape_cast %41 : vector<1xf32> to vector<1x1xf32>
    %43 = vector.broadcast %42 : vector<1x1xf32> to vector<1x2xf32>
    %44 = arith.divf %40, %43 : vector<1x2xf32>
    %c0_30 = arith.constant 0 : index
    %c0_31 = arith.constant 0 : index
    %45 = vector.load %arg8[%c0_30, %c0_31] : memref<1x2xf32, #tpu.memory_space<vmem>>, vector<1x2xf32>
    tpu.vector_store %arg8[%c0_30, %c0_31], %44 {strides = array<i32>} : memref<1x2xf32, #tpu.memory_space<vmem>>, vector<1x2xf32>,
    return
  }
}

</mosaic_0001>

<bundles_post_ra>
// kernel: gmapad_gcn_forward.1
= control target key start
LH: loop header
LB: loop body
LE: loop exit
PB: predicated region body
PF: predicated region fallthrough
CT: control target
= control target key end

     0   :  { %16 = vsyncpa [#allocation3], 0  ;;  %s2829_s0 = inlined_call_operand.vmem [shape: bf16[256,256], index: 0, kind: input, shape index: {}]   ;;  %s2830_s1 = inlined_call_operand.vmem [shape: bf16[256,128], index: 1, kind: input, shape index: {}]   ;;  %s2831_s2 = inlined_call_operand.vmem [shape: bf16[128,128], index: 2, kind: input, shape index: {}]   ;;  %s2832_s3 = inlined_call_operand.vmem [shape: f32[1,128], index: 3, kind: input, shape index: {}]   ;;  %s2833_s4 = inlined_call_operand.vmem [shape: bf16[128,128], index: 4, kind: input, shape index: {}]   ;;  %s2834_s5 = inlined_call_operand.vmem [shape: f32[1,128], index: 5, kind: input, shape index: {}]   ;;  %s2835_s6 = inlined_call_operand.vmem [shape: f32[128,2], index: 6, kind: input, shape index: {}]   ;;  %s2836_s7 = inlined_call_operand.vmem [shape: f32[1,2], index: 7, kind: input, shape index: {}]   ;;  %s2837_s8 = inlined_call_operand.hbm [shape: f32[1,2], index: 8, kind: output, shape index: {0}]   ;;  %s2838_s9 = inlined_call_operand.vmem [shape: f32[256,128], index: 9, kind: output, shape index: {1}]   ;;  %s2839_s10 = inlined_call_operand.hbm [shape: f32[1,128], index: 10, kind: output, shape index: {2}]  }
   0x1   :  { %v2068_v0 = vld [vmem:[%s2831_s2] sm:$0xff]   ;;  %v2069_v1 = vld [vmem:[%s2831_s2 + $0x8] sm:$0xff]   ;;  %v2070_v2 = vld [vmem:[%s2831_s2 + $0x10] sm:$0xff]  }
   0x2   :  { %1908 = vmatprep.subr.bf16.mxu1 %v2068_v0  ;;  %v2071_v3 = vld [vmem:[%s2831_s2 + $0x18] sm:$0xff]   ;;  %v2076_v4 = vld [vmem:[%s2830_s1] sm:$0xff]   ;;  %v2073_v6 = vld [vmem:[%s2831_s2 + $0x28] sm:$0xff]  }
   0x3   :  { %1909 = vmatpush3.bf16.msra.mxu1 %v2068_v0  ;;  %1924 = vmatprep.mubr.bf16.mxu1 %v2076_v4  ;;  %v2072_v5 = vld [vmem:[%s2831_s2 + $0x20] sm:$0xff]   ;;  %v2074_v7 = vld [vmem:[%s2831_s2 + $0x30] sm:$0xff]   ;;  %v2075_v8 = vld [vmem:[%s2831_s2 + $0x38] sm:$0xff]  }
   0x4   :  { %1910 = vmatprep.subr.bf16.mxu1 %v2069_v1  ;;  %v2077_v9 = vld [vmem:[%s2830_s1 + $0x8] sm:$0xff]   ;;  %v2078_v10 = vld [vmem:[%s2830_s1 + $0x10] sm:$0xff]   ;;  %v2079_v11 = vld [vmem:[%s2830_s1 + $0x18] sm:$0xff]  }
   0x5   :  { %v2080_v12 = vld [vmem:[%s2830_s1 + $0x20] sm:$0xff]  }
   0x7   :  { %1911 = vmatpush3.bf16.msra.mxu1 %v2069_v1 }
   0x8   :  { %1912 = vmatprep.subr.bf16.mxu1 %v2070_v2 }
   0xb   :  { %1913 = vmatpush3.bf16.msra.mxu1 %v2070_v2 }
   0xc   :  { %1914 = vmatprep.subr.bf16.mxu1 %v2071_v3 }
   0xf   :  { %1915 = vmatpush3.bf16.msra.mxu1 %v2071_v3 }
  0x10   :  { %1916 = vmatprep.subr.bf16.mxu1 %v2072_v5 }
  0x13   :  { %1917 = vmatpush3.bf16.msra.mxu1 %v2072_v5 }
  0x14   :  { %1918 = vmatprep.subr.bf16.mxu1 %v2073_v6 }
  0x17   :  { %1919 = vmatpush3.bf16.msra.mxu1 %v2073_v6 }
  0x18   :  { %1920 = vmatprep.subr.bf16.mxu1 %v2074_v7 }
  0x1b   :  { %1921 = vmatpush3.bf16.msra.mxu1 %v2074_v7 }
  0x1c   :  { %1922 = vmatprep.subr.bf16.mxu1 %v2075_v8 }
  0x1f   :  { %1923 = vmatpush3.bf16.msra.mxu1 %v2075_v8 }
  0x22   :  { %1925 = vmatmul.mubr.bf16.vlgmr.msra.gmra.mrb[0].mxu1 %v2077_v9 }
  0x23   :  { %1928 = vmatprep.mubr.bf16.mxu1 %v2078_v10 }
  0x24   :  { %17 = vsyncpa [#allocation5], 0  ;;  %v2081_v13 = vld [vmem:[%s2830_s1 + $0x28] sm:$0xff]   ;;  %v2082_v14 = vld [vmem:[%s2830_s1 + $0x30] sm:$0xff]   ;;  %vm2202_vm0 = vmmov 0   ;;  %vm1508_vm1 = vcmask 8192  }
  0x25   :  { %v2083_v15 = vld [vmem:[%s2830_s1 + $0x38] sm:$0xff]   ;;  %v2084_v16 = vld [vmem:[%s2830_s1 + $0x40] sm:$0xff]   ;;  %v2085_v17 = vld [vmem:[%s2830_s1 + $0x48] sm:$0xff]  }
  0x26   :  { %v2086_v18 = vld [vmem:[%s2830_s1 + $0x50] sm:$0xff]   ;;  %v2087_v19 = vld [vmem:[%s2830_s1 + $0x58] sm:$0xff]   ;;  %v2088_v20 = vld [vmem:[%s2830_s1 + $0x60] sm:$0xff]  }
  0x27   :  { %v2089_v21 = vld [vmem:[%s2830_s1 + $0x68] sm:$0xff]   ;;  %v2090_v22 = vld [vmem:[%s2830_s1 + $0x70] sm:$0xff]   ;;  %v2091_v23 = vld [vmem:[%s2830_s1 + $0x78] sm:$0xff]  }
  0x28   :  { %v2335_v24 = vld [vmem:[%s2829_s0 + $0x4] ss:$8 sps:$4 sm:$0xff]  }
  0x29   :  { %v2140_v9 = vld [vmem:[%s2833_s4] sm:$0xff]   ;;  %v2141_v10 = vld [vmem:[%s2833_s4 + $0x8] sm:$0xff]  }
  0x2a   :  { %1929 = vmatmul.mubr.bf16.gmra.mrb[4].mxu1 %v2079_v11  ;;  %1956 = vmatprep.subr.bf16.mxu0 %v2140_v9  ;;  %v2347_v11 = vld [vmem:[%s2829_s0] ss:$8 sps:$4 sm:$0xff]  }
  0x2b   :  { %1932 = vmatprep.mubr.bf16.mxu1 %v2080_v12  ;;  %1957 = vmatpush3.bf16.msra.mxu0 %v2140_v9  ;;  %v2142_v12 = vld [vmem:[%s2833_s4 + $0x10] sm:$0xff]  }
  0x2c   :  { %1958 = vmatprep.subr.bf16.mxu0 %v2141_v10 }
  0x2f   :  { %1959 = vmatpush3.bf16.msra.mxu0 %v2141_v10 }
  0x30   :  { %1960 = vmatprep.subr.bf16.mxu0 %v2142_v12 }
  0x32   :  { %1933 = vmatmul.mubr.bf16.gmra.mrb[8].mxu1 %v2081_v13  ;;  %v2355_v13 = vld [vmem:[%s2829_s0 + $0x14] ss:$8 sps:$4 sm:$0xff]  }
  0x33   :  { %1936 = vmatprep.mubr.bf16.mxu1 %v2082_v14  ;;  %v2143_v14 = vld [vmem:[%s2833_s4 + $0x18] sm:$0xff]   ;;  %1961 = vmatpush3.bf16.msra.mxu0 %v2142_v12 }
  0x34   :  { %1962 = vmatprep.subr.bf16.mxu0 %v2143_v14 }
  0x37   :  { %1963 = vmatpush3.bf16.msra.mxu0 %v2143_v14 }
  0x3a   :  { %1937 = vmatmul.mubr.bf16.gmra.mrb[12].mxu1 %v2083_v15  ;;  %v2365_v15 = vld [vmem:[%s2829_s0 + $0x10] ss:$8 sps:$4 sm:$0xff]  }
  0x3b   :  { %1940 = vmatprep.mubr.bf16.mxu1 %v2084_v16  ;;  %v2370_v16 = vld [vmem:[%s2829_s0 + $0x24] ss:$8 sps:$4 sm:$0xff]  }
  0x42   :  { %1941 = vmatmul.mubr.bf16.gmra.mrb[16].mxu1 %v2085_v17  ;;  %v2377_v17 = vld [vmem:[%s2829_s0 + $0x20] ss:$8 sps:$4 sm:$0xff]  }
  0x43   :  { %1944 = vmatprep.mubr.bf16.mxu1 %v2086_v18  ;;  %v2382_v18 = vld [vmem:[%s2829_s0 + $0x34] ss:$8 sps:$4 sm:$0xff]  }
  0x4a   :  { %1945 = vmatmul.mubr.bf16.gmra.mrb[20].mxu1 %v2087_v19  ;;  %v2389_v19 = vld [vmem:[%s2829_s0 + $0x30] ss:$8 sps:$4 sm:$0xff]  }
  0x4b   :  { %1948 = vmatprep.mubr.bf16.mxu1 %v2088_v20  ;;  %v2394_v20 = vld [vmem:[%s2829_s0 + $0x44] ss:$8 sps:$4 sm:$0xff]  }
  0x52   :  { %1949 = vmatmul.mubr.bf16.gmra.mrb[24].mxu1 %v2089_v21  ;;  %v2401_v21 = vld [vmem:[%s2829_s0 + $0x40] ss:$8 sps:$4 sm:$0xff]  }
  0x53   :  { %1952 = vmatprep.mubr.bf16.mxu1 %v2090_v22  ;;  %v2406_v22 = vld [vmem:[%s2829_s0 + $0x54] ss:$8 sps:$4 sm:$0xff]  }
  0x5a   :  { %1953 = vmatmul.mubr.bf16.gmra.mrb[28].mxu1 %v2091_v23  ;;  %v2413_v23 = vld [vmem:[%s2829_s0 + $0x50] ss:$8 sps:$4 sm:$0xff]  }
  0x5b   :  { %635 = vmatprep.mubr.bf16.mxu1 %v2335_v24 }
  0xf5   :  { %v1926_v25 = vpop.f32.mrb[0].mxu1 }
  0xf6   :  { %v293_v26 = vpop.f32.mrb[1].mxu1 }
  0xf7   :  { %v1927_v27 = vpop.f32.mrb[2].mxu1 }
  0xf8   :  { %v421_v28 = vpack.c.bf16 %v1927_v27, %v1926_v25  ;;  %v296_v29 = vpop.f32.mrb[3].mxu1  ;;  %v2418_v25 = vld [vmem:[%s2829_s0 + $0x64] ss:$8 sps:$4 sm:$0xff]   ;;  %v2430_v27 = vld [vmem:[%s2829_s0 + $0x74] ss:$8 sps:$4 sm:$0xff]  }
  0xf9   :  { %v420_v30 = vpack.c.bf16 %v296_v29, %v293_v26  ;;  %v2425_v26 = vld [vmem:[%s2829_s0 + $0x60] ss:$8 sps:$4 sm:$0xff]   ;;  %v2442_v29 = vld [vmem:[%s2829_s0 + $0x84] ss:$8 sps:$4 sm:$0xff]  }
  0xfd   :  { %v1930_v31 = vpop.f32.mrb[4].mxu1 }
  0xfe   :  { %v309_v32 = vpop.f32.mrb[5].mxu1 }
  0xff   :  { %v1931_v33 = vpop.f32.mrb[6].mxu1 }
 0x100   :  { %v423_v34 = vpack.c.bf16 %v1931_v33, %v1930_v31  ;;  %v312_v35 = vpop.f32.mrb[7].mxu1  ;;  %v2454_v31 = vld [vmem:[%s2829_s0 + $0x94] ss:$8 sps:$4 sm:$0xff]   ;;  %v2466_v33 = vld [vmem:[%s2829_s0 + $0xa4] ss:$8 sps:$4 sm:$0xff]  }
 0x101   :  { %v422_v36 = vpack.c.bf16 %v312_v35, %v309_v32  ;;  %v2461_v32 = vld [vmem:[%s2829_s0 + $0x90] ss:$8 sps:$4 sm:$0xff]   ;;  %v2478_v35 = vld [vmem:[%s2829_s0 + $0xb4] ss:$8 sps:$4 sm:$0xff]  }
 0x105   :  { %v1934_v37 = vpop.f32.mrb[8].mxu1 }
 0x106   :  { %v325_v38 = vpop.f32.mrb[9].mxu1 }
 0x107   :  { %v1935_v39 = vpop.f32.mrb[10].mxu1 }
 0x108   :  { %v425_v40 = vpack.c.bf16 %v1935_v39, %v1934_v37  ;;  %v328_v41 = vpop.f32.mrb[11].mxu1  ;;  %v2490_v37 = vld [vmem:[%s2829_s0 + $0xc4] ss:$8 sps:$4 sm:$0xff]  }
 0x109   :  { %v424_v42 = vpack.c.bf16 %v328_v41, %v325_v38  ;;  %v2144_v38 = vld [vmem:[%s2833_s4 + $0x20] sm:$0xff]   ;;  %v2145_v39 = vld [vmem:[%s2833_s4 + $0x28] sm:$0xff]   ;;  %v2508_v41 = vld [vmem:[%s2829_s0 + $0xd4] ss:$8 sps:$4 sm:$0xff]  }
 0x10a   :  { %1964 = vmatprep.subr.bf16.mxu0 %v2144_v38 }
 0x10b   :  { %1965 = vmatpush3.bf16.msra.mxu0 %v2144_v38 }
 0x10c   :  { %1966 = vmatprep.subr.bf16.mxu0 %v2145_v39 }
 0x10d   :  { %v1938_v43 = vpop.f32.mrb[12].mxu1 }
 0x10e   :  { %v341_v44 = vpop.f32.mrb[13].mxu1 }
 0x10f   :  { %v1939_v45 = vpop.f32.mrb[14].mxu1  ;;  %1967 = vmatpush3.bf16.msra.mxu0 %v2145_v39 }
 0x110   :  { %v427_v46 = vpack.c.bf16 %v1939_v45, %v1938_v43  ;;  %v344_v47 = vpop.f32.mrb[15].mxu1  ;;  %v2147_v43 = vld [vmem:[%s2833_s4 + $0x38] sm:$0xff]   ;;  %v2526_v45 = vld [vmem:[%s2829_s0 + $0xe4] ss:$8 sps:$4 sm:$0xff]  }
 0x111   :  { %v426_v48 = vpack.c.bf16 %v344_v47, %v341_v44  ;;  %v2521_v44 = vld [vmem:[%s2829_s0 + $0xd0] ss:$8 sps:$4 sm:$0xff]   ;;  %v2538_v47 = vld [vmem:[%s2829_s0 + $0xf4] ss:$8 sps:$4 sm:$0xff]  }
 0x115   :  { %v1942_v49 = vpop.f32.mrb[16].mxu1 }
 0x116   :  { %v357_v50 = vpop.f32.mrb[17].mxu1 }
 0x117   :  { %v1943_v51 = vpop.f32.mrb[18].mxu1 }
 0x118   :  { %v429_v52 = vpack.c.bf16 %v1943_v51, %v1942_v49  ;;  %v360_v53 = vpop.f32.mrb[19].mxu1  ;;  %v2551_v51 = vld [vmem:[%s2832_s3] ss:$0 sm:$0xff] }
 0x119   :  { %v428_v54 = vpack.c.bf16 %v360_v53, %v357_v50 }
 0x11b   :  { %1643 = vmatprep.subr.bf16.mxu1 %v428_v54 }
 0x11c   :  { %1644 = vmatpush3.bf16.msra.mxu1 %v420_v30  ;;  %v2449_v30 = vld [vmem:[%s2829_s0 + $0x80] ss:$8 sps:$4 sm:$0xff]  }
 0x11d   :  { %v1946_v55 = vpop.f32.mrb[20].mxu1  ;;  %1645 = vmatprep.subr.bf16.mxu1 %v429_v52 }
 0x11e   :  { %v373_v56 = vpop.f32.mrb[21].mxu1 }
 0x11f   :  { %v1947_v57 = vpop.f32.mrb[22].mxu1 }
 0x120   :  { %v431_v58 = vpack.c.bf16 %v1947_v57, %v1946_v55  ;;  %v376_v59 = vpop.f32.mrb[23].mxu1  ;;  %1646 = vmatpush3.bf16.msra.mxu1 %v421_v28  ;;  %v2437_v28 = vld [vmem:[%s2829_s0 + $0x70] ss:$8 sps:$4 sm:$0xff]  }
 0x121   :  { %v430_v60 = vpack.c.bf16 %v376_v59, %v373_v56 }
 0x123   :  { %1647 = vmatprep.subr.bf16.mxu1 %v430_v60 }
 0x124   :  { %1648 = vmatpush3.bf16.msra.mxu1 %v422_v36  ;;  %v2485_v36 = vld [vmem:[%s2829_s0 + $0xb0] ss:$8 sps:$4 sm:$0xff]  }
 0x125   :  { %v1950_v61 = vpop.f32.mrb[24].mxu1  ;;  %1649 = vmatprep.subr.bf16.mxu1 %v431_v58 }
 0x126   :  { %v389_v62 = vpop.f32.mrb[25].mxu1 }
 0x127   :  { %v1951_v63 = vpop.f32.mrb[26].mxu1 }
 0x128   :  { %v433_v0 = vpack.c.bf16 %v1951_v63, %v1950_v61  ;;  %v392_v1 = vpop.f32.mrb[27].mxu1  ;;  %1650 = vmatpush3.bf16.msra.mxu1 %v423_v34  ;;  %v2473_v34 = vld [vmem:[%s2829_s0 + $0xa0] ss:$8 sps:$4 sm:$0xff]  }
 0x129   :  { %v432_v2 = vpack.c.bf16 %v392_v1, %v389_v62 }
 0x12b   :  { %1651 = vmatprep.subr.bf16.mxu1 %v432_v2 }
 0x12c   :  { %1652 = vmatpush3.bf16.msra.mxu1 %v424_v42  ;;  %v2146_v42 = vld [vmem:[%s2833_s4 + $0x30] sm:$0xff]   ;;  %s2203_s4 = smov [#allocation4]  }
 0x12d   :  { %v1954_v3 = vpop.f32.mrb[28].mxu1  ;;  %1653 = vmatprep.subr.bf16.mxu1 %v433_v0  ;;  %1968 = vmatprep.subr.bf16.mxu0 %v2146_v42  ;;  %s1539_s28 = sshll.u32 %s2203_s4, 4  ;;  %s1540_s28 = int_to_ptr.vmem [resolvable:$true] %s1539_s28 }
 0x12e   :  { %v405_v4 = vpop.f32.mrb[29].mxu1  ;;  %1969 = vmatpush3.bf16.msra.mxu0 %v2146_v42  ;;  %s2152_s29 = scalar_lea.vmem %s1540_s28, 16  ;;  %p2157_p1 = scmp.lt.s32.totalorder %s1540_s28, %s1540_s28 }
 0x12f   :  { %v1955_v5 = vpop.f32.mrb[30].mxu1  ;;  %1970 = vmatprep.subr.bf16.mxu0 %v2147_v43  ;;  %p2153_p0 = scmp.ne.s32.totalorder %s1540_s28, %s2152_s29 }
 0x130   :  { %v435_v6 = vpack.c.bf16 %v1955_v5, %v1954_v3  ;;  %v408_v7 = vpop.f32.mrb[31].mxu1  ;;  %1654 = vmatpush3.bf16.msra.mxu1 %v425_v40  ;;  %v2503_v40 = vld [vmem:[%s2829_s0 + $0xc0] ss:$8 sps:$4 sm:$0xff]  }
 0x131   :  { %v434_v8 = vpack.c.bf16 %v408_v7, %v405_v4 }
 0x132   :  { %1971 = vmatpush3.bf16.msra.mxu0 %v2147_v43 }
 0x133   :  { %1655 = vmatprep.subr.bf16.mxu1 %v434_v8 }
 0x134   :  { %1656 = vmatpush3.bf16.msra.mxu1 %v426_v48  ;;  %v2545_v48 = vld [vmem:[%s2829_s0 + $0xf0] ss:$8 sps:$4 sm:$0xff]  }
 0x135   :  { %1657 = vmatprep.subr.bf16.mxu1 %v435_v6 }
 0x138   :  { %1658 = vmatpush3.bf16.msra.mxu1 %v427_v46  ;;  %v2533_v46 = vld [vmem:[%s2829_s0 + $0xe0] ss:$8 sps:$4 sm:$0xff]  }
 0x13b   :  { %636 = vmatmul.mubr.bf16.vlgmr.msra.gmra.mrb[32].mxu1 %v2347_v11 }
 0x13c   :  { %643 = vmatprep.mubr.bf16.mxu1 %v2355_v13 }
 0x143   :  { %644 = vmatmul.mubr.bf16.gmra.mrb[36].mxu1 %v2365_v15 }
 0x144   :  { %651 = vmatprep.mubr.bf16.mxu1 %v2370_v16 }
 0x14b   :  { %652 = vmatmul.mubr.bf16.gmra.mrb[40].mxu1 %v2377_v17 }
 0x14c   :  { %659 = vmatprep.mubr.bf16.mxu1 %v2382_v18 }
 0x153   :  { %660 = vmatmul.mubr.bf16.gmra.mrb[44].mxu1 %v2389_v19 }
 0x154   :  { %667 = vmatprep.mubr.bf16.mxu1 %v2394_v20 }
 0x15b   :  { %668 = vmatmul.mubr.bf16.gmra.mrb[48].mxu1 %v2401_v21 }
 0x15c   :  { %675 = vmatprep.mubr.bf16.mxu1 %v2406_v22 }
 0x163   :  { %676 = vmatmul.mubr.bf16.gmra.mrb[52].mxu1 %v2413_v23 }
 0x164   :  { %683 = vmatprep.mubr.bf16.mxu1 %v2418_v25 }
 0x16b   :  { %684 = vmatmul.mubr.bf16.gmra.mrb[56].mxu1 %v2425_v26 }
 0x16c   :  { %691 = vmatprep.mubr.bf16.mxu1 %v2430_v27 }
 0x173   :  { %692 = vmatmul.mubr.bf16.gmra.mrb[60].mxu1 %v2437_v28 }
 0x174   :  { %699 = vmatprep.mubr.bf16.mxu1 %v2442_v29 }
 0x17b   :  { %700 = vmatmul.mubr.bf16.gmra.mrb[64].mxu1 %v2449_v30 }
 0x17c   :  { %707 = vmatprep.mubr.bf16.mxu1 %v2454_v31 }
 0x183   :  { %708 = vmatmul.mubr.bf16.gmra.mrb[68].mxu1 %v2461_v32 }
 0x184   :  { %715 = vmatprep.mubr.bf16.mxu1 %v2466_v33 }
 0x18b   :  { %716 = vmatmul.mubr.bf16.gmra.mrb[72].mxu1 %v2473_v34 }
 0x18c   :  { %723 = vmatprep.mubr.bf16.mxu1 %v2478_v35 }
 0x193   :  { %724 = vmatmul.mubr.bf16.gmra.mrb[76].mxu1 %v2485_v36 }
 0x194   :  { %731 = vmatprep.mubr.bf16.mxu1 %v2490_v37 }
 0x19b   :  { %732 = vmatmul.mubr.bf16.gmra.mrb[80].mxu1 %v2503_v40 }
 0x19c   :  { %739 = vmatprep.mubr.bf16.mxu1 %v2508_v41 }
 0x1a3   :  { %740 = vmatmul.mubr.bf16.gmra.mrb[84].mxu1 %v2521_v44 }
 0x1a4   :  { %747 = vmatprep.mubr.bf16.mxu1 %v2526_v45 }
 0x1ab   :  { %748 = vmatmul.mubr.bf16.gmra.mrb[88].mxu1 %v2533_v46 }
 0x1ac   :  { %755 = vmatprep.mubr.bf16.mxu1 %v2538_v47 }
 0x1b3   :  { %756 = vmatmul.mubr.bf16.gmra.mrb[92].mxu1 %v2545_v48 }
 0x20e   :  { %v1659_v49 = vpop.f32.mrb[32].mxu1 }
 0x20f   :  { %v1660_v50 = vpop.f32.mrb[33].mxu1 }
 0x210   :  { %v1661_v52 = vadd.f32 %v1660_v50, %v1659_v49  ;;  %v1662_v53 = vpop.f32.mrb[34].mxu1 }
 0x211   :  { %v1663_v54 = vpop.f32.mrb[35].mxu1 }
 0x212   :  { %v1664_v55 = vadd.f32 %v1663_v54, %v1662_v53  ;;  %v638_v56 = vadd.f32 %v1661_v52, %v2551_v51 }
 0x214   :  { %v641_v57 = vadd.f32 %v1664_v55, %v2551_v51  ;;  %v764_v59 = vmax.f32 %v638_v56, 0.0 }
 0x216   :  { %v1665_v58 = vpop.f32.mrb[36].mxu1  ;;  %v765_v60 = vmax.f32 %v641_v57, 0.0 }
 0x217   :  { %v1666_v61 = vpop.f32.mrb[37].mxu1 }
 0x218   :  { %v1667_v62 = vadd.f32 %v1666_v61, %v1665_v58  ;;  %v1668_v63 = vpop.f32.mrb[38].mxu1  ;;  %v796_v0 = vpack.c.bf16 %v765_v60, %v764_v59 }
 0x219   :  { %v1669_v1 = vpop.f32.mrb[39].mxu1 }
 0x21a   :  { %v646_v2 = vadd.f32 %v1667_v62, %v2551_v51  ;;  %v1670_v3 = vadd.f32 %v1669_v1, %v1668_v63  ;;  %1972 = vmatprep.mubr.bf16.mxu0 %v796_v0 }
 0x21c   :  { %v649_v4 = vadd.f32 %v1670_v3, %v2551_v51  ;;  %v766_v5 = vmax.f32 %v646_v2, 0.0 }
 0x21e   :  { %v767_v6 = vmax.f32 %v649_v4, 0.0  ;;  %v1671_v7 = vpop.f32.mrb[40].mxu1 }
 0x21f   :  { %v1672_v8 = vpop.f32.mrb[41].mxu1 }
 0x220   :  { %v1673_v9 = vadd.f32 %v1672_v8, %v1671_v7  ;;  %v797_v10 = vpack.c.bf16 %v767_v6, %v766_v5  ;;  %v1674_v12 = vpop.f32.mrb[42].mxu1 }
 0x221   :  { %v1675_v14 = vpop.f32.mrb[43].mxu1 }
 0x222   :  { %v654_v38 = vadd.f32 %v1673_v9, %v2551_v51  ;;  %1973 = vmatmul.mubr.bf16.vlgmr.msra.gmra.mrb[0].mxu0 %v797_v10  ;;  %v1676_v39 = vadd.f32 %v1675_v14, %v1674_v12 }
 0x224   :  { %v657_v42 = vadd.f32 %v1676_v39, %v2551_v51  ;;  %v768_v43 = vmax.f32 %v654_v38, 0.0 }
 0x226   :  { %v769_v49 = vmax.f32 %v657_v42, 0.0  ;;  %v1677_v50 = vpop.f32.mrb[44].mxu1 }
 0x227   :  { %v1678_v52 = vpop.f32.mrb[45].mxu1 }
 0x228   :  { %v1679_v53 = vadd.f32 %v1678_v52, %v1677_v50  ;;  %v1680_v54 = vpop.f32.mrb[46].mxu1  ;;  %v798_v55 = vpack.c.bf16 %v769_v49, %v768_v43 }
 0x229   :  { %v1681_v56 = vpop.f32.mrb[47].mxu1 }
 0x22a   :  { %v662_v57 = vadd.f32 %v1679_v53, %v2551_v51  ;;  %v1682_v58 = vadd.f32 %v1681_v56, %v1680_v54  ;;  %1976 = vmatprep.mubr.bf16.mxu0 %v798_v55 }
 0x22c   :  { %v665_v59 = vadd.f32 %v1682_v58, %v2551_v51  ;;  %v770_v60 = vmax.f32 %v662_v57, 0.0 }
 0x22e   :  { %v771_v61 = vmax.f32 %v665_v59, 0.0  ;;  %v1683_v62 = vpop.f32.mrb[48].mxu1 }
 0x22f   :  { %v1684_v63 = vpop.f32.mrb[49].mxu1 }
 0x230   :  { %v1685_v0 = vadd.f32 %v1684_v63, %v1683_v62  ;;  %v1686_v1 = vpop.f32.mrb[50].mxu1  ;;  %v799_v2 = vpack.c.bf16 %v771_v61, %v770_v60 }
 0x231   :  { %v1687_v3 = vpop.f32.mrb[51].mxu1 }
 0x232   :  { %v670_v4 = vadd.f32 %v1685_v0, %v2551_v51  ;;  %1977 = vmatmul.mubr.bf16.gmra.mrb[4].mxu0 %v799_v2  ;;  %v1688_v5 = vadd.f32 %v1687_v3, %v1686_v1 }
 0x234   :  { %v673_v6 = vadd.f32 %v1688_v5, %v2551_v51  ;;  %v772_v7 = vmax.f32 %v670_v4, 0.0 }
 0x236   :  { %v773_v8 = vmax.f32 %v673_v6, 0.0  ;;  %v1689_v9 = vpop.f32.mrb[52].mxu1 }
 0x237   :  { %v1690_v10 = vpop.f32.mrb[53].mxu1 }
 0x238   :  { %v1691_v12 = vadd.f32 %v1690_v10, %v1689_v9  ;;  %v1692_v14 = vpop.f32.mrb[54].mxu1  ;;  %v800_v38 = vpack.c.bf16 %v773_v8, %v772_v7 }
 0x239   :  { %v1693_v39 = vpop.f32.mrb[55].mxu1 }
 0x23a   :  { %v678_v42 = vadd.f32 %v1691_v12, %v2551_v51  ;;  %v1694_v43 = vadd.f32 %v1693_v39, %v1692_v14  ;;  %1980 = vmatprep.mubr.bf16.mxu0 %v800_v38 }
 0x23c   :  { %v681_v49 = vadd.f32 %v1694_v43, %v2551_v51  ;;  %v774_v50 = vmax.f32 %v678_v42, 0.0 }
 0x23e   :  { %v775_v52 = vmax.f32 %v681_v49, 0.0  ;;  %v1695_v53 = vpop.f32.mrb[56].mxu1 }
 0x23f   :  { %v1696_v54 = vpop.f32.mrb[57].mxu1 }
 0x240   :  { %v1697_v55 = vadd.f32 %v1696_v54, %v1695_v53  ;;  %v1698_v56 = vpop.f32.mrb[58].mxu1  ;;  %v801_v57 = vpack.c.bf16 %v775_v52, %v774_v50 }
 0x241   :  { %v1699_v58 = vpop.f32.mrb[59].mxu1 }
 0x242   :  { %v686_v59 = vadd.f32 %v1697_v55, %v2551_v51  ;;  %v1700_v60 = vadd.f32 %v1699_v58, %v1698_v56  ;;  %1981 = vmatmul.mubr.bf16.gmra.mrb[8].mxu0 %v801_v57 }
 0x244   :  { %v689_v61 = vadd.f32 %v1700_v60, %v2551_v51  ;;  %v776_v62 = vmax.f32 %v686_v59, 0.0 }
 0x246   :  { %v777_v63 = vmax.f32 %v689_v61, 0.0  ;;  %v1701_v0 = vpop.f32.mrb[60].mxu1 }
 0x247   :  { %v1702_v1 = vpop.f32.mrb[61].mxu1 }
 0x248   :  { %v1703_v2 = vadd.f32 %v1702_v1, %v1701_v0  ;;  %v1704_v3 = vpop.f32.mrb[62].mxu1  ;;  %v802_v4 = vpack.c.bf16 %v777_v63, %v776_v62 }
 0x249   :  { %v1705_v5 = vpop.f32.mrb[63].mxu1 }
 0x24a   :  { %v694_v6 = vadd.f32 %v1703_v2, %v2551_v51  ;;  %v1706_v7 = vadd.f32 %v1705_v5, %v1704_v3  ;;  %1984 = vmatprep.mubr.bf16.mxu0 %v802_v4 }
 0x24c   :  { %v697_v8 = vadd.f32 %v1706_v7, %v2551_v51  ;;  %v778_v9 = vmax.f32 %v694_v6, 0.0 }
 0x24e   :  { %v779_v10 = vmax.f32 %v697_v8, 0.0  ;;  %v1707_v12 = vpop.f32.mrb[64].mxu1 }
 0x24f   :  { %v1708_v14 = vpop.f32.mrb[65].mxu1 }
 0x250   :  { %v1709_v38 = vadd.f32 %v1708_v14, %v1707_v12  ;;  %v1710_v39 = vpop.f32.mrb[66].mxu1  ;;  %v803_v42 = vpack.c.bf16 %v779_v10, %v778_v9 }
 0x251   :  { %v1711_v43 = vpop.f32.mrb[67].mxu1 }
 0x252   :  { %v702_v49 = vadd.f32 %v1709_v38, %v2551_v51  ;;  %v1712_v50 = vadd.f32 %v1711_v43, %v1710_v39  ;;  %1985 = vmatmul.mubr.bf16.gmra.mrb[12].mxu0 %v803_v42 }
 0x254   :  { %v705_v52 = vadd.f32 %v1712_v50, %v2551_v51  ;;  %v780_v53 = vmax.f32 %v702_v49, 0.0 }
 0x256   :  { %v781_v54 = vmax.f32 %v705_v52, 0.0  ;;  %v1713_v55 = vpop.f32.mrb[68].mxu1 }
 0x257   :  { %v1714_v56 = vpop.f32.mrb[69].mxu1 }
 0x258   :  { %v1715_v57 = vadd.f32 %v1714_v56, %v1713_v55  ;;  %v1716_v58 = vpop.f32.mrb[70].mxu1  ;;  %v804_v59 = vpack.c.bf16 %v781_v54, %v780_v53 }
 0x259   :  { %v1717_v60 = vpop.f32.mrb[71].mxu1 }
 0x25a   :  { %v710_v61 = vadd.f32 %v1715_v57, %v2551_v51  ;;  %v1718_v62 = vadd.f32 %v1717_v60, %v1716_v58  ;;  %1988 = vmatprep.mubr.bf16.mxu0 %v804_v59 }
 0x25c   :  { %v713_v63 = vadd.f32 %v1718_v62, %v2551_v51  ;;  %v782_v0 = vmax.f32 %v710_v61, 0.0 }
 0x25e   :  { %v783_v1 = vmax.f32 %v713_v63, 0.0  ;;  %v1719_v2 = vpop.f32.mrb[72].mxu1 }
 0x25f   :  { %v1720_v3 = vpop.f32.mrb[73].mxu1 }
 0x260   :  { %v805_v4 = vpack.c.bf16 %v783_v1, %v782_v0  ;;  %v1721_v5 = vadd.f32 %v1720_v3, %v1719_v2  ;;  %v1722_v6 = vpop.f32.mrb[74].mxu1 }
 0x261   :  { %v1723_v7 = vpop.f32.mrb[75].mxu1 }
 0x262   :  { %1989 = vmatmul.mubr.bf16.gmra.mrb[16].mxu0 %v805_v4  ;;  %v718_v8 = vadd.f32 %v1721_v5, %v2551_v51  ;;  %v1724_v9 = vadd.f32 %v1723_v7, %v1722_v6 }
 0x264   :  { %v721_v10 = vadd.f32 %v1724_v9, %v2551_v51  ;;  %v784_v12 = vmax.f32 %v718_v8, 0.0 }
 0x266   :  { %v785_v14 = vmax.f32 %v721_v10, 0.0  ;;  %v1725_v38 = vpop.f32.mrb[76].mxu1 }
 0x267   :  { %v1726_v39 = vpop.f32.mrb[77].mxu1 }
 0x268   :  { %v1727_v42 = vadd.f32 %v1726_v39, %v1725_v38  ;;  %v1728_v43 = vpop.f32.mrb[78].mxu1  ;;  %v806_v49 = vpack.c.bf16 %v785_v14, %v784_v12 }
 0x269   :  { %v1729_v50 = vpop.f32.mrb[79].mxu1 }
 0x26a   :  { %v726_v52 = vadd.f32 %v1727_v42, %v2551_v51  ;;  %v1730_v53 = vadd.f32 %v1729_v50, %v1728_v43  ;;  %1992 = vmatprep.mubr.bf16.mxu0 %v806_v49 }
 0x26c   :  { %v729_v54 = vadd.f32 %v1730_v53, %v2551_v51  ;;  %v786_v55 = vmax.f32 %v726_v52, 0.0 }
 0x26e   :  { %v787_v56 = vmax.f32 %v729_v54, 0.0  ;;  %v1731_v57 = vpop.f32.mrb[80].mxu1 }
 0x26f   :  { %v1732_v58 = vpop.f32.mrb[81].mxu1 }
 0x270   :  { %v807_v59 = vpack.c.bf16 %v787_v56, %v786_v55  ;;  %v1733_v60 = vadd.f32 %v1732_v58, %v1731_v57  ;;  %v1734_v61 = vpop.f32.mrb[82].mxu1 }
 0x271   :  { %v1735_v62 = vpop.f32.mrb[83].mxu1 }
 0x272   :  { %1993 = vmatmul.mubr.bf16.gmra.mrb[20].mxu0 %v807_v59  ;;  %v734_v63 = vadd.f32 %v1733_v60, %v2551_v51  ;;  %v1736_v0 = vadd.f32 %v1735_v62, %v1734_v61 }
 0x274   :  { %v737_v1 = vadd.f32 %v1736_v0, %v2551_v51  ;;  %v788_v2 = vmax.f32 %v734_v63, 0.0 }
 0x276   :  { %v789_v3 = vmax.f32 %v737_v1, 0.0  ;;  %v1737_v4 = vpop.f32.mrb[84].mxu1 }
 0x277   :  { %v1738_v5 = vpop.f32.mrb[85].mxu1 }
 0x278   :  { %v1739_v6 = vadd.f32 %v1738_v5, %v1737_v4  ;;  %v1740_v7 = vpop.f32.mrb[86].mxu1  ;;  %v808_v8 = vpack.c.bf16 %v789_v3, %v788_v2 }
 0x279   :  { %v1741_v9 = vpop.f32.mrb[87].mxu1 }
 0x27a   :  { %v742_v10 = vadd.f32 %v1739_v6, %v2551_v51  ;;  %v1742_v12 = vadd.f32 %v1741_v9, %v1740_v7  ;;  %1996 = vmatprep.mubr.bf16.mxu0 %v808_v8 }
 0x27c   :  { %v745_v14 = vadd.f32 %v1742_v12, %v2551_v51  ;;  %v790_v38 = vmax.f32 %v742_v10, 0.0 }
 0x27e   :  { %v791_v39 = vmax.f32 %v745_v14, 0.0  ;;  %v1743_v42 = vpop.f32.mrb[88].mxu1 }
 0x27f   :  { %v1744_v43 = vpop.f32.mrb[89].mxu1 }
 0x280   :  { %v809_v49 = vpack.c.bf16 %v791_v39, %v790_v38  ;;  %v1745_v50 = vadd.f32 %v1744_v43, %v1743_v42  ;;  %v1746_v52 = vpop.f32.mrb[90].mxu1 }
 0x281   :  { %v1747_v53 = vpop.f32.mrb[91].mxu1 }
 0x282   :  { %1997 = vmatmul.mubr.bf16.gmra.mrb[24].mxu0 %v809_v49  ;;  %v750_v54 = vadd.f32 %v1745_v50, %v2551_v51  ;;  %v1748_v55 = vadd.f32 %v1747_v53, %v1746_v52 }
 0x284   :  { %v753_v56 = vadd.f32 %v1748_v55, %v2551_v51  ;;  %v792_v57 = vmax.f32 %v750_v54, 0.0 }
 0x286   :  { %v793_v58 = vmax.f32 %v753_v56, 0.0  ;;  %v1749_v59 = vpop.f32.mrb[92].mxu1 }
 0x287   :  { %v1750_v60 = vpop.f32.mrb[93].mxu1 }
 0x288   :  { %v1751_v61 = vadd.f32 %v1750_v60, %v1749_v59  ;;  %v1752_v62 = vpop.f32.mrb[94].mxu1  ;;  %v810_v63 = vpack.c.bf16 %v793_v58, %v792_v57 }
 0x289   :  { %v1753_v0 = vpop.f32.mrb[95].mxu1 }
 0x28a   :  { %v758_v1 = vadd.f32 %v1751_v61, %v2551_v51  ;;  %v1754_v2 = vadd.f32 %v1753_v0, %v1752_v62  ;;  %2000 = vmatprep.mubr.bf16.mxu0 %v810_v63 }
 0x28c   :  { %v761_v3 = vadd.f32 %v1754_v2, %v2551_v51  ;;  %v794_v4 = vmax.f32 %v758_v1, 0.0 }
 0x28e   :  { %v795_v5 = vmax.f32 %v761_v3, 0.0 }
 0x290   :  { %v811_v6 = vpack.c.bf16 %v795_v5, %v794_v4 }
 0x292   :  { %2001 = vmatmul.mubr.bf16.gmra.mrb[28].mxu0 %v811_v6 }
 0x293   :  { %1092 = vmatprep.mubr.bf16.mxu0 %v2335_v24 }
 0x2f5   :  { %v1974_v7 = vpop.f32.mrb[0].mxu0 }
 0x2f6   :  { %v910_v8 = vpop.f32.mrb[1].mxu0 }
 0x2f7   :  { %v1975_v9 = vpop.f32.mrb[2].mxu0 }
 0x2f8   :  { %v1038_v10 = vpack.c.bf16 %v1975_v9, %v1974_v7  ;;  %v913_v12 = vpop.f32.mrb[3].mxu0 }
 0x2f9   :  { %v1037_v14 = vpack.c.bf16 %v913_v12, %v910_v8  ;;  %v1421_v12 = vld [vmem:[%s2835_s6] sm:$0xff] }
 0x305   :  { %v1978_v38 = vpop.f32.mrb[4].mxu0 }
 0x306   :  { %v926_v39 = vpop.f32.mrb[5].mxu0 }
 0x307   :  { %v1979_v42 = vpop.f32.mrb[6].mxu0 }
 0x308   :  { %v1040_v43 = vpack.c.bf16 %v1979_v42, %v1978_v38  ;;  %v929_v49 = vpop.f32.mrb[7].mxu0  ;;  %v2200_v38 = vmov 0.0|0.0  }
 0x309   :  { %v1039_v50 = vpack.c.bf16 %v929_v49, %v926_v39  ;;  %2039 = vmatprep.subr.bf16.mxu1 %v2200_v38 }
 0x315   :  { %v1982_v52 = vpop.f32.mrb[8].mxu0 }
 0x316   :  { %v942_v51 = vpop.f32.mrb[9].mxu0 }
 0x317   :  { %v1983_v53 = vpop.f32.mrb[10].mxu0 }
 0x318   :  { %v1042_v54 = vpack.c.bf16 %v1983_v53, %v1982_v52  ;;  %v945_v55 = vpop.f32.mrb[11].mxu0 }
 0x319   :  { %v1041_v56 = vpack.c.bf16 %v945_v55, %v942_v51 }
 0x325   :  { %v1986_v57 = vpop.f32.mrb[12].mxu0 }
 0x326   :  { %v958_v24 = vpop.f32.mrb[13].mxu0 }
 0x327   :  { %v1987_v58 = vpop.f32.mrb[14].mxu0 }
 0x328   :  { %v1044_v59 = vpack.c.bf16 %v1987_v58, %v1986_v57  ;;  %v961_v60 = vpop.f32.mrb[15].mxu0 }
 0x329   :  { %v1043_v61 = vpack.c.bf16 %v961_v60, %v958_v24 }
 0x335   :  { %v1990_v62 = vpop.f32.mrb[16].mxu0 }
 0x336   :  { %v974_v63 = vpop.f32.mrb[17].mxu0 }
 0x337   :  { %v1991_v0 = vpop.f32.mrb[18].mxu0 }
 0x338   :  { %v1046_v1 = vpack.c.bf16 %v1991_v0, %v1990_v62  ;;  %v977_v2 = vpop.f32.mrb[19].mxu0 }
 0x339   :  { %v1045_v3 = vpack.c.bf16 %v977_v2, %v974_v63 }
 0x33b   :  { %1779 = vmatprep.subr.bf16.mxu0 %v1045_v3 }
 0x33c   :  { %1780 = vmatpush3.bf16.msra.mxu0 %v1037_v14  ;;  %v1422_v14 = vld [vmem:[%s2835_s6 + $0x8] sm:$0xff] }
 0x33d   :  { %1781 = vmatprep.subr.bf16.mxu0 %v1046_v1 }
 0x340   :  { %1782 = vmatpush3.bf16.msra.mxu0 %v1038_v10  ;;  %v2040_v10 = vpack.c.bf16 %v1422_v14, %v1421_v12 }
 0x342   :  { %2041 = vmatpush3.bf16.msra.mxu1 %v2040_v10 }
 0x343   :  { %2042 = vmatprep.subr.bf16.mxu1 %v2200_v38 }
 0x345   :  { %v1994_v4 = vpop.f32.mrb[20].mxu0 }
 0x346   :  { %v990_v5 = vpop.f32.mrb[21].mxu0 }
 0x347   :  { %v1995_v6 = vpop.f32.mrb[22].mxu0 }
 0x348   :  { %v1048_v7 = vpack.c.bf16 %v1995_v6, %v1994_v4  ;;  %v993_v8 = vpop.f32.mrb[23].mxu0 }
 0x349   :  { %v1047_v9 = vpack.c.bf16 %v993_v8, %v990_v5 }
 0x34b   :  { %1783 = vmatprep.subr.bf16.mxu0 %v1047_v9 }
 0x34c   :  { %1784 = vmatpush3.bf16.msra.mxu0 %v1039_v50 }
 0x34d   :  { %1785 = vmatprep.subr.bf16.mxu0 %v1048_v7 }
 0x350   :  { %1786 = vmatpush3.bf16.msra.mxu0 %v1040_v43 }
 0x355   :  { %v1998_v39 = vpop.f32.mrb[24].mxu0 }
 0x356   :  { %v1006_v42 = vpop.f32.mrb[25].mxu0 }
 0x357   :  { %v1999_v49 = vpop.f32.mrb[26].mxu0 }
 0x358   :  { %v1050_v50 = vpack.c.bf16 %v1999_v49, %v1998_v39  ;;  %v1009_v43 = vpop.f32.mrb[27].mxu0 }
 0x359   :  { %v1049_v52 = vpack.c.bf16 %v1009_v43, %v1006_v42 }
 0x35b   :  { %1787 = vmatprep.subr.bf16.mxu0 %v1049_v52 }
 0x35c   :  { %1788 = vmatpush3.bf16.msra.mxu0 %v1041_v56 }
 0x35d   :  { %1789 = vmatprep.subr.bf16.mxu0 %v1050_v50 }
 0x360   :  { %1790 = vmatpush3.bf16.msra.mxu0 %v1042_v54 }
 0x365   :  { %v2002_v51 = vpop.f32.mrb[28].mxu0 }
 0x366   :  { %v1022_v53 = vpop.f32.mrb[29].mxu0 }
 0x367   :  { %v2003_v55 = vpop.f32.mrb[30].mxu0 }
 0x368   :  { %v1052_v57 = vpack.c.bf16 %v2003_v55, %v2002_v51  ;;  %v1025_v24 = vpop.f32.mrb[31].mxu0 }
 0x369   :  { %v1051_v58 = vpack.c.bf16 %v1025_v24, %v1022_v53 }
 0x36b   :  { %1791 = vmatprep.subr.bf16.mxu0 %v1051_v58 }
 0x36c   :  { %1792 = vmatpush3.bf16.msra.mxu0 %v1043_v61 }
 0x36d   :  { %1793 = vmatprep.subr.bf16.mxu0 %v1052_v57 }
 0x370   :  { %1794 = vmatpush3.bf16.msra.mxu0 %v1044_v59 }
 0x373   :  { %1093 = vmatmul.mubr.bf16.vlgmr.msra.gmra.mrb[32].mxu0 %v2347_v11  ;;  %v1423_v11 = vld [vmem:[%s2835_s6 + $0x10] sm:$0xff] }
 0x374   :  { %1100 = vmatprep.mubr.bf16.mxu0 %v2355_v13  ;;  %v1424_v13 = vld [vmem:[%s2835_s6 + $0x18] sm:$0xff] }
 0x37b   :  { %1101 = vmatmul.mubr.bf16.gmra.mrb[36].mxu0 %v2365_v15  ;;  %v2043_v15 = vpack.c.bf16 %v1424_v13, %v1423_v11 }
 0x37c   :  { %1108 = vmatprep.mubr.bf16.mxu0 %v2370_v16  ;;  %v1425_v16 = vld [vmem:[%s2835_s6 + $0x20] sm:$0xff] }
 0x37d   :  { %2044 = vmatpush3.bf16.msra.mxu1 %v2043_v15 }
 0x37e   :  { %2045 = vmatprep.subr.bf16.mxu1 %v2200_v38 }
 0x383   :  { %1109 = vmatmul.mubr.bf16.gmra.mrb[40].mxu0 %v2377_v17  ;;  %v1426_v17 = vld [vmem:[%s2835_s6 + $0x28] sm:$0xff] }
 0x384   :  { %1116 = vmatprep.mubr.bf16.mxu0 %v2382_v18  ;;  %v2046_v18 = vpack.c.bf16 %v1426_v17, %v1425_v16 }
 0x386   :  { %2047 = vmatpush3.bf16.msra.mxu1 %v2046_v18 }
 0x387   :  { %2048 = vmatprep.subr.bf16.mxu1 %v2200_v38 }
 0x38b   :  { %1117 = vmatmul.mubr.bf16.gmra.mrb[44].mxu0 %v2389_v19  ;;  %v1427_v19 = vld [vmem:[%s2835_s6 + $0x30] sm:$0xff] }
 0x38c   :  { %1124 = vmatprep.mubr.bf16.mxu0 %v2394_v20  ;;  %v1428_v20 = vld [vmem:[%s2835_s6 + $0x38] sm:$0xff] }
 0x393   :  { %1125 = vmatmul.mubr.bf16.gmra.mrb[48].mxu0 %v2401_v21  ;;  %v2049_v21 = vpack.c.bf16 %v1428_v20, %v1427_v19 }
 0x394   :  { %1132 = vmatprep.mubr.bf16.mxu0 %v2406_v22  ;;  %v1429_v22 = vld [vmem:[%s2835_s6 + $0x40] sm:$0xff] }
 0x395   :  { %2050 = vmatpush3.bf16.msra.mxu1 %v2049_v21 }
 0x396   :  { %2051 = vmatprep.subr.bf16.mxu1 %v2200_v38 }
 0x39b   :  { %1133 = vmatmul.mubr.bf16.gmra.mrb[52].mxu0 %v2413_v23  ;;  %v1430_v23 = vld [vmem:[%s2835_s6 + $0x48] sm:$0xff] }
 0x39c   :  { %1140 = vmatprep.mubr.bf16.mxu0 %v2418_v25  ;;  %v2052_v25 = vpack.c.bf16 %v1430_v23, %v1429_v22 }
 0x39e   :  { %2053 = vmatpush3.bf16.msra.mxu1 %v2052_v25 }
 0x39f   :  { %2054 = vmatprep.subr.bf16.mxu1 %v2200_v38 }
 0x3a3   :  { %1141 = vmatmul.mubr.bf16.gmra.mrb[56].mxu0 %v2425_v26  ;;  %v1431_v26 = vld [vmem:[%s2835_s6 + $0x50] sm:$0xff] }
 0x3a4   :  { %1148 = vmatprep.mubr.bf16.mxu0 %v2430_v27  ;;  %v1432_v27 = vld [vmem:[%s2835_s6 + $0x58] sm:$0xff] }
 0x3ab   :  { %1149 = vmatmul.mubr.bf16.gmra.mrb[60].mxu0 %v2437_v28  ;;  %v2055_v28 = vpack.c.bf16 %v1432_v27, %v1431_v26 }
 0x3ac   :  { %1156 = vmatprep.mubr.bf16.mxu0 %v2442_v29  ;;  %v1433_v29 = vld [vmem:[%s2835_s6 + $0x60] sm:$0xff] }
 0x3ad   :  { %2056 = vmatpush3.bf16.msra.mxu1 %v2055_v28 }
 0x3ae   :  { %2057 = vmatprep.subr.bf16.mxu1 %v2200_v38 }
 0x3b3   :  { %1157 = vmatmul.mubr.bf16.gmra.mrb[64].mxu0 %v2449_v30  ;;  %v1434_v30 = vld [vmem:[%s2835_s6 + $0x68] sm:$0xff] }
 0x3b4   :  { %1164 = vmatprep.mubr.bf16.mxu0 %v2454_v31  ;;  %v2058_v31 = vpack.c.bf16 %v1434_v30, %v1433_v29 }
 0x3b6   :  { %2059 = vmatpush3.bf16.msra.mxu1 %v2058_v31 }
 0x3b7   :  { %2060 = vmatprep.subr.bf16.mxu1 %v2200_v38 }
 0x3bb   :  { %1165 = vmatmul.mubr.bf16.gmra.mrb[68].mxu0 %v2461_v32  ;;  %v1435_v32 = vld [vmem:[%s2835_s6 + $0x70] sm:$0xff] }
 0x3bc   :  { %1172 = vmatprep.mubr.bf16.mxu0 %v2466_v33  ;;  %v1436_v33 = vld [vmem:[%s2835_s6 + $0x78] sm:$0xff] }
 0x3c3   :  { %1173 = vmatmul.mubr.bf16.gmra.mrb[72].mxu0 %v2473_v34  ;;  %v2061_v34 = vpack.c.bf16 %v1436_v33, %v1435_v32 }
 0x3c4   :  { %1180 = vmatprep.mubr.bf16.mxu0 %v2478_v35  ;;  %v2201_v35 = vmov 0.0  }
 0x3c5   :  { %2062 = vmatpush3.bf16.msra.mxu1 %v2061_v34  ;;  %1375 = vst [vmem:[%s2838_s9 + $0xc8] sm:$0xff] %v2201_v35  ;;  %1376 = vst [vmem:[%s2838_s9 + $0xd0] sm:$0xff] %v2201_v35  ;;  %2036 = vmatprep.mubr.msk.f32.mxu1 %vm2202_vm0, %v2201_v35 }
 0x3c6   :  { %1377 = vst [vmem:[%s2838_s9 + $0xd8] sm:$0xff] %v2201_v35  ;;  %1378 = vst [vmem:[%s2838_s9 + $0xe0] sm:$0xff] %v2201_v35 }
 0x3c7   :  { %1379 = vst [vmem:[%s2838_s9 + $0xe8] sm:$0xff] %v2201_v35  ;;  %1380 = vst [vmem:[%s2838_s9 + $0xf0] sm:$0xff] %v2201_v35 }
 0x3c8   :  { %1381 = vst [vmem:[%s2838_s9 + $0xf8] sm:$0xff] %v2201_v35 }
 0x3cb   :  { %1181 = vmatmul.mubr.bf16.gmra.mrb[76].mxu0 %v2485_v36 }
 0x3cc   :  { %1188 = vmatprep.mubr.bf16.mxu0 %v2490_v37  ;;  %v2697_v37 = vld [vmem:[%s2834_s5] ss:$0 sm:$0xff] }
 0x3d3   :  { %1189 = vmatmul.mubr.bf16.gmra.mrb[80].mxu0 %v2503_v40 }
 0x3d4   :  { %1196 = vmatprep.mubr.bf16.mxu0 %v2508_v41 }
 0x3db   :  { %1197 = vmatmul.mubr.bf16.gmra.mrb[84].mxu0 %v2521_v44 }
 0x3dc   :  { %1204 = vmatprep.mubr.bf16.mxu0 %v2526_v45 }
 0x3e3   :  { %1205 = vmatmul.mubr.bf16.gmra.mrb[88].mxu0 %v2533_v46 }
 0x3e4   :  { %1212 = vmatprep.mubr.bf16.mxu0 %v2538_v47 }
 0x3eb   :  { %1213 = vmatmul.mubr.bf16.gmra.mrb[92].mxu0 %v2545_v48 }
 0x446   :  { %v1795_v36 = vpop.f32.mrb[32].mxu0 }
 0x447   :  { %v1796_v40 = vpop.f32.mrb[33].mxu0 }
 0x448   :  { %v1797_v41 = vadd.f32 %v1796_v40, %v1795_v36  ;;  %v1798_v44 = vpop.f32.mrb[34].mxu0 }
 0x449   :  { %v1799_v45 = vpop.f32.mrb[35].mxu0 }
 0x44a   :  { %v1095_v46 = vadd.f32 %v1797_v41, %v2697_v37  ;;  %v1800_v47 = vadd.f32 %v1799_v45, %v1798_v44 }
 0x44c   :  { %v1221_v48 = vmax.f32 %v1095_v46, 0.0  ;;  %v1098_v54 = vadd.f32 %v1800_v47, %v2697_v37 }
 0x44e   :  { %1350 = vst [vmem:[%s2838_s9] sm:$0xff] %v1221_v48  ;;  %v1222_v56 = vmax.f32 %v1098_v54, 0.0  ;;  %v1801_v59 = vpop.f32.mrb[36].mxu0 }
 0x44f   :  { %v1802_v60 = vpop.f32.mrb[37].mxu0 }
 0x450   :  { %1351 = vst [vmem:[%s2838_s9 + $0x8] sm:$0xff] %v1222_v56  ;;  %v1382_v61 = vadd.f32 %v1222_v56, %v1221_v48  ;;  %v1803_v62 = vadd.f32 %v1802_v60, %v1801_v59  ;;  %v1804_v63 = vpop.f32.mrb[38].mxu0 }
 0x451   :  { %v1805_v0 = vpop.f32.mrb[39].mxu0 }
 0x452   :  { %v1103_v1 = vadd.f32 %v1803_v62, %v2697_v37  ;;  %v1806_v2 = vadd.f32 %v1805_v0, %v1804_v63 }
 0x454   :  { %v1223_v3 = vmax.f32 %v1103_v1, 0.0  ;;  %v1106_v4 = vadd.f32 %v1806_v2, %v2697_v37 }
 0x456   :  { %1352 = vst [vmem:[%s2838_s9 + $0x10] sm:$0xff] %v1223_v3  ;;  %v1383_v5 = vadd.f32 %v1382_v61, %v1223_v3  ;;  %v1224_v6 = vmax.f32 %v1106_v4, 0.0  ;;  %v1807_v7 = vpop.f32.mrb[40].mxu0 }
 0x457   :  { %v1808_v8 = vpop.f32.mrb[41].mxu0 }
 0x458   :  { %1353 = vst [vmem:[%s2838_s9 + $0x18] sm:$0xff] %v1224_v6  ;;  %v1384_v9 = vadd.f32 %v1383_v5, %v1224_v6  ;;  %v1809_v12 = vadd.f32 %v1808_v8, %v1807_v7  ;;  %v1810_v14 = vpop.f32.mrb[42].mxu0 }
 0x459   :  { %v1811_v38 = vpop.f32.mrb[43].mxu0 }
 0x45a   :  { %v1111_v10 = vadd.f32 %v1809_v12, %v2697_v37  ;;  %v1812_v39 = vadd.f32 %v1811_v38, %v1810_v14 }
 0x45c   :  { %v1225_v42 = vmax.f32 %v1111_v10, 0.0  ;;  %v1114_v49 = vadd.f32 %v1812_v39, %v2697_v37 }
 0x45e   :  { %1354 = vst [vmem:[%s2838_s9 + $0x20] sm:$0xff] %v1225_v42  ;;  %v1385_v50 = vadd.f32 %v1384_v9, %v1225_v42  ;;  %v1226_v43 = vmax.f32 %v1114_v49, 0.0  ;;  %v1813_v52 = vpop.f32.mrb[44].mxu0 }
 0x45f   :  { %v1814_v51 = vpop.f32.mrb[45].mxu0 }
 0x460   :  { %1355 = vst [vmem:[%s2838_s9 + $0x28] sm:$0xff] %v1226_v43  ;;  %v1386_v53 = vadd.f32 %v1385_v50, %v1226_v43  ;;  %v1815_v55 = vadd.f32 %v1814_v51, %v1813_v52  ;;  %v1816_v57 = vpop.f32.mrb[46].mxu0 }
 0x461   :  { %v1817_v24 = vpop.f32.mrb[47].mxu0 }
 0x462   :  { %v1119_v58 = vadd.f32 %v1815_v55, %v2697_v37  ;;  %v1818_v11 = vadd.f32 %v1817_v24, %v1816_v57 }
 0x464   :  { %v1227_v13 = vmax.f32 %v1119_v58, 0.0  ;;  %v1122_v15 = vadd.f32 %v1818_v11, %v2697_v37 }
 0x466   :  { %1356 = vst [vmem:[%s2838_s9 + $0x30] sm:$0xff] %v1227_v13  ;;  %v1387_v16 = vadd.f32 %v1386_v53, %v1227_v13  ;;  %v1228_v17 = vmax.f32 %v1122_v15, 0.0  ;;  %v1819_v18 = vpop.f32.mrb[48].mxu0 }
 0x467   :  { %v1820_v19 = vpop.f32.mrb[49].mxu0 }
 0x468   :  { %1357 = vst [vmem:[%s2838_s9 + $0x38] sm:$0xff] %v1228_v17  ;;  %v1388_v20 = vadd.f32 %v1387_v16, %v1228_v17  ;;  %v1821_v21 = vadd.f32 %v1820_v19, %v1819_v18  ;;  %v1822_v22 = vpop.f32.mrb[50].mxu0 }
 0x469   :  { %v1823_v23 = vpop.f32.mrb[51].mxu0 }
 0x46a   :  { %v1127_v25 = vadd.f32 %v1821_v21, %v2697_v37  ;;  %v1824_v26 = vadd.f32 %v1823_v23, %v1822_v22 }
 0x46c   :  { %v1229_v27 = vmax.f32 %v1127_v25, 0.0  ;;  %v1130_v28 = vadd.f32 %v1824_v26, %v2697_v37 }
 0x46e   :  { %1358 = vst [vmem:[%s2838_s9 + $0x40] sm:$0xff] %v1229_v27  ;;  %v1389_v29 = vadd.f32 %v1388_v20, %v1229_v27  ;;  %v1230_v30 = vmax.f32 %v1130_v28, 0.0  ;;  %v1825_v31 = vpop.f32.mrb[52].mxu0 }
 0x46f   :  { %v1826_v32 = vpop.f32.mrb[53].mxu0 }
 0x470   :  { %1359 = vst [vmem:[%s2838_s9 + $0x48] sm:$0xff] %v1230_v30  ;;  %v1390_v33 = vadd.f32 %v1389_v29, %v1230_v30  ;;  %v1827_v34 = vadd.f32 %v1826_v32, %v1825_v31  ;;  %v1828_v35 = vpop.f32.mrb[54].mxu0 }
 0x471   :  { %v1829_v36 = vpop.f32.mrb[55].mxu0 }
 0x472   :  { %v1135_v40 = vadd.f32 %v1827_v34, %v2697_v37  ;;  %v1830_v41 = vadd.f32 %v1829_v36, %v1828_v35 }
 0x474   :  { %v1231_v44 = vmax.f32 %v1135_v40, 0.0  ;;  %v1138_v45 = vadd.f32 %v1830_v41, %v2697_v37 }
 0x476   :  { %1360 = vst [vmem:[%s2838_s9 + $0x50] sm:$0xff] %v1231_v44  ;;  %v1391_v46 = vadd.f32 %v1390_v33, %v1231_v44  ;;  %v1232_v47 = vmax.f32 %v1138_v45, 0.0  ;;  %v1831_v48 = vpop.f32.mrb[56].mxu0 }
 0x477   :  { %v1832_v54 = vpop.f32.mrb[57].mxu0 }
 0x478   :  { %1361 = vst [vmem:[%s2838_s9 + $0x58] sm:$0xff] %v1232_v47  ;;  %v1392_v56 = vadd.f32 %v1391_v46, %v1232_v47  ;;  %v1833_v59 = vadd.f32 %v1832_v54, %v1831_v48  ;;  %v1834_v60 = vpop.f32.mrb[58].mxu0 }
 0x479   :  { %v1835_v61 = vpop.f32.mrb[59].mxu0 }
 0x47a   :  { %v1143_v62 = vadd.f32 %v1833_v59, %v2697_v37  ;;  %v1836_v63 = vadd.f32 %v1835_v61, %v1834_v60 }
 0x47c   :  { %v1233_v0 = vmax.f32 %v1143_v62, 0.0  ;;  %v1146_v1 = vadd.f32 %v1836_v63, %v2697_v37 }
 0x47e   :  { %1362 = vst [vmem:[%s2838_s9 + $0x60] sm:$0xff] %v1233_v0  ;;  %v1393_v2 = vadd.f32 %v1392_v56, %v1233_v0  ;;  %v1234_v3 = vmax.f32 %v1146_v1, 0.0  ;;  %v1837_v4 = vpop.f32.mrb[60].mxu0 }
 0x47f   :  { %v1838_v5 = vpop.f32.mrb[61].mxu0 }
 0x480   :  { %1363 = vst [vmem:[%s2838_s9 + $0x68] sm:$0xff] %v1234_v3  ;;  %v1394_v6 = vadd.f32 %v1393_v2, %v1234_v3  ;;  %v1839_v7 = vadd.f32 %v1838_v5, %v1837_v4  ;;  %v1840_v8 = vpop.f32.mrb[62].mxu0 }
 0x481   :  { %v1841_v9 = vpop.f32.mrb[63].mxu0 }
 0x482   :  { %v1151_v12 = vadd.f32 %v1839_v7, %v2697_v37  ;;  %v1842_v14 = vadd.f32 %v1841_v9, %v1840_v8 }
 0x484   :  { %v1235_v38 = vmax.f32 %v1151_v12, 0.0  ;;  %v1154_v10 = vadd.f32 %v1842_v14, %v2697_v37 }
 0x486   :  { %1364 = vst [vmem:[%s2838_s9 + $0x70] sm:$0xff] %v1235_v38  ;;  %v1395_v39 = vadd.f32 %v1394_v6, %v1235_v38  ;;  %v1236_v42 = vmax.f32 %v1154_v10, 0.0  ;;  %v1843_v49 = vpop.f32.mrb[64].mxu0 }
 0x487   :  { %v1844_v50 = vpop.f32.mrb[65].mxu0 }
 0x488   :  { %1365 = vst [vmem:[%s2838_s9 + $0x78] sm:$0xff] %v1236_v42  ;;  %v1396_v43 = vadd.f32 %v1395_v39, %v1236_v42  ;;  %v1845_v52 = vadd.f32 %v1844_v50, %v1843_v49  ;;  %v1846_v51 = vpop.f32.mrb[66].mxu0 }
 0x489   :  { %v1847_v53 = vpop.f32.mrb[67].mxu0 }
 0x48a   :  { %v1159_v55 = vadd.f32 %v1845_v52, %v2697_v37  ;;  %v1848_v57 = vadd.f32 %v1847_v53, %v1846_v51 }
 0x48c   :  { %v1237_v24 = vmax.f32 %v1159_v55, 0.0  ;;  %v1162_v58 = vadd.f32 %v1848_v57, %v2697_v37 }
 0x48e   :  { %1366 = vst [vmem:[%s2838_s9 + $0x80] sm:$0xff] %v1237_v24  ;;  %v1397_v11 = vadd.f32 %v1396_v43, %v1237_v24  ;;  %v1238_v13 = vmax.f32 %v1162_v58, 0.0  ;;  %v1849_v15 = vpop.f32.mrb[68].mxu0 }
 0x48f   :  { %v1850_v16 = vpop.f32.mrb[69].mxu0 }
 0x490   :  { %1367 = vst [vmem:[%s2838_s9 + $0x88] sm:$0xff] %v1238_v13  ;;  %v1398_v17 = vadd.f32 %v1397_v11, %v1238_v13  ;;  %v1851_v18 = vadd.f32 %v1850_v16, %v1849_v15  ;;  %v1852_v19 = vpop.f32.mrb[70].mxu0  ;;  %v1437_v15 = vld [vmem:[%s2836_s7] sm:$0x1]  ;;  %s2156_s7 = scalar_lea.vmem %s1540_s28, 32 }
 0x491   :  { %v1853_v20 = vpop.f32.mrb[71].mxu0  ;;  %p2158_p2 = scmp.lt.s32.totalorder %s2156_s7, %s2152_s29 }
 0x492   :  { %v1167_v21 = vadd.f32 %v1851_v18, %v2697_v37  ;;  %v1854_v22 = vadd.f32 %v1853_v20, %v1852_v19 }
 0x493   :  { %p2159_p3 = por %p2158_p2, %p2157_p1 }
 0x494   :  { %v1239_v23 = vmax.f32 %v1167_v21, 0.0  ;;  %v1170_v25 = vadd.f32 %v1854_v22, %v2697_v37 }
 0x495   :  { %p2160_p4 = pnand %p2159_p3, %p2153_p0 }
 0x496   :  { %1368 = vst [vmem:[%s2838_s9 + $0x90] sm:$0xff] %v1239_v23  ;;  %v1399_v26 = vadd.f32 %v1398_v17, %v1239_v23  ;;  %v1240_v27 = vmax.f32 %v1170_v25, 0.0  ;;  %v1855_v28 = vpop.f32.mrb[72].mxu0 }
 0x497   :  { %v1856_v29 = vpop.f32.mrb[73].mxu0 }
 0x498   :  { %1369 = vst [vmem:[%s2838_s9 + $0x98] sm:$0xff] %v1240_v27  ;;  %v1400_v30 = vadd.f32 %v1399_v26, %v1240_v27  ;;  %v1857_v31 = vadd.f32 %v1856_v29, %v1855_v28  ;;  %v1858_v32 = vpop.f32.mrb[74].mxu0 }
 0x499   :  { %v1859_v33 = vpop.f32.mrb[75].mxu0 }
 0x49a   :  { %v1175_v34 = vadd.f32 %v1857_v31, %v2697_v37  ;;  %v1860_v35 = vadd.f32 %v1859_v33, %v1858_v32 }
 0x49c   :  { %v1241_v36 = vmax.f32 %v1175_v34, 0.0  ;;  %v1178_v40 = vadd.f32 %v1860_v35, %v2697_v37 }
 0x49e   :  { %1370 = vst [vmem:[%s2838_s9 + $0xa0] sm:$0xff] %v1241_v36  ;;  %v1401_v41 = vadd.f32 %v1400_v30, %v1241_v36  ;;  %v1242_v44 = vmax.f32 %v1178_v40, 0.0  ;;  %v1861_v45 = vpop.f32.mrb[76].mxu0 }
 0x49f   :  { %v1862_v46 = vpop.f32.mrb[77].mxu0 }
 0x4a0   :  { %1371 = vst [vmem:[%s2838_s9 + $0xa8] sm:$0xff] %v1242_v44  ;;  %v1402_v47 = vadd.f32 %v1401_v41, %v1242_v44  ;;  %v1863_v48 = vadd.f32 %v1862_v46, %v1861_v45  ;;  %v1864_v54 = vpop.f32.mrb[78].mxu0 }
 0x4a1   :  { %v1865_v56 = vpop.f32.mrb[79].mxu0 }
 0x4a2   :  { %v1183_v59 = vadd.f32 %v1863_v48, %v2697_v37  ;;  %v1866_v60 = vadd.f32 %v1865_v56, %v1864_v54 }
 0x4a4   :  { %v1243_v61 = vmax.f32 %v1183_v59, 0.0  ;;  %v1186_v62 = vadd.f32 %v1866_v60, %v2697_v37 }
 0x4a6   :  { %1372 = vst [vmem:[%s2838_s9 + $0xb0] sm:$0xff] %v1243_v61  ;;  %v1403_v63 = vadd.f32 %v1402_v47, %v1243_v61  ;;  %v1244_v0 = vmax.f32 %v1186_v62, 0.0  ;;  %v1867_v1 = vpop.f32.mrb[80].mxu0 }
 0x4a7   :  { %v1868_v2 = vpop.f32.mrb[81].mxu0 }
 0x4a8   :  { %1373 = vst [vmem:[%s2838_s9 + $0xb8] sm:$0xff] %v1244_v0  ;;  %v1404_v3 = vadd.f32 %v1403_v63, %v1244_v0  ;;  %v1869_v4 = vadd.f32 %v1868_v2, %v1867_v1  ;;  %v1870_v5 = vpop.f32.mrb[82].mxu0 }
 0x4a9   :  { %v1871_v6 = vpop.f32.mrb[83].mxu0 }
 0x4aa   :  { %v1191_v7 = vadd.f32 %v1869_v4, %v2697_v37 }
 0x4ac   :  { %v1245_v8 = vmax.f32 %v1191_v7, 0.0 }
 0x4ae   :  { %1374 = vst [vmem:[%s2838_s9 + $0xc0] sm:$0xff] %v1245_v8  ;;  %v1405_v9 = vadd.f32 %v1404_v3, %v1245_v8  ;;  %v1873_v12 = vpop.f32.mrb[84].mxu0 }
 0x4af   :  { %v1874_v14 = vpop.f32.mrb[85].mxu0 }
 0x4b0   :  { %v1413_v38 = vrot.slane %v1405_v9, 4  ;;  %v1876_v10 = vpop.f32.mrb[86].mxu0 }
 0x4b1   :  { %v1877_v39 = vpop.f32.mrb[87].mxu0 }
 0x4b2   :  { %v1414_v42 = vadd.f32 %v1413_v38, %v1405_v9 }
 0x4b4   :  { %v1415_v49 = vrot.slane %v1414_v42, 2 }
 0x4b6   :  { %v1416_v50 = vadd.f32 %v1415_v49, %v1414_v42  ;;  %v1879_v43 = vpop.f32.mrb[88].mxu0 }
 0x4b7   :  { %v1880_v52 = vpop.f32.mrb[89].mxu0 }
 0x4b8   :  { %v1417_v51 = vrot.slane %v1416_v50, 1  ;;  %v1882_v53 = vpop.f32.mrb[90].mxu0 }
 0x4b9   :  { %v1883_v55 = vpop.f32.mrb[91].mxu0 }
 0x4ba   :  { %v1418_v37 = vadd.f32 %v1417_v51, %v1416_v50 }
 0x4bc   :  { %v1419_v57 = vmul.f32 0.005, %v1418_v37 }
 0x4be   :  { %1420 = vst [vmem:[#allocation4] sm:$0x1] %v1419_v57  ;;  %2037 = vmatmul.mubr.f32.vlgmr.msra.gmra.mrb[96].mxu1 %v1419_v57  ;;  %v1885_v24 = vpop.f32.mrb[92].mxu0 }
 0x4bf   :  { %v1886_v58 = vpop.f32.mrb[93].mxu0 }
 0x4c0   :  { %v1888_v11 = vpop.f32.mrb[94].mxu0 }
 0x4c1   :  { %v1889_v13 = vpop.f32.mrb[95].mxu0 }
 0x591   :  { %v1504_v16 = vpop.f32.mrb[96].mxu1 }
 0x592   :  { %v1505_v17 = vadd.f32 %v1504_v16, %v1437_v15  ;;  %v2038_v18 = vpop.f32.mrb[97].mxu1 }
 0x594   :  { %v1509_v19 = vsel %vm1508_vm1, %v1505_v17, -inf }
 0x595   :  { %1510 = vmax.xlane.f32.xlu0 %v1509_v19 }
 0x622   :  { %v1511_v20 = vpop.xlane.xlu0 %1510 }
 0x623   :  { %v1512_v21 = vsub.f32 %v1505_v17, %v1511_v20 }
 0x625   :  { %v1513_v22 = vmul.f32 1.442695, %v1512_v21 }
 0x627   :  { %2148 = vpow2.f32 %v1513_v22 }
 0x631   :  { %v2149_v23 = vpop.eup %2148 }
 0x632   :  { %v1515_v25 = vsel %vm1508_vm1, %v2149_v23, 0.0 }
 0x633   :  { %1516 = vadd.xlane.f32.xlu0 %v1515_v25 }
 0x634   :  { %2163 = shalt.err (!%p2160_p4)
}
 0x635   :  { %s2164_s12 = scalar_lea.hbm %s2839_s10, 16 }
 0x636   :  { %p2165_p5 = scmp.ne.s32.totalorder %s2839_s10, %s2164_s12  ;;  %p2168_p6 = scmp.lt.u32.totalorder %s2164_s12, %s2839_s10 }
 0x638   :  { %p2170_p7 = pnand %p2168_p6, %p2165_p5 }
 0x63a   :  { %2173 = shalt.err (!%p2170_p7)
}
 0x63b   :  { %1542 = dma.vmem_to_hbm [thread:$0]  %s1540_s28, 16, %s2839_s10, [#allocation5]  }
 0x63c   :  { %s2204_s16 = smov [#allocation2]  }
 0x63d   :  { %s1527_s17 = sshll.u32 %s2204_s16, 4  ;;  %s1528_s17 = int_to_ptr.vmem [resolvable:$true] %s1527_s17 }
 0x63e   :  { %s2174_s2 = scalar_lea.vmem %s1528_s17, 16  ;;  %s2178_s18 = scalar_lea.vmem %s1528_s17, 32 }
 0x63f   :  { %p2175_p8 = scmp.ne.s32.totalorder %s1528_s17, %s2174_s2  ;;  %p2179_p9 = scmp.lt.s32.totalorder %s1528_s17, %s1528_s17 }
 0x640   :  { %p2180_p10 = scmp.lt.s32.totalorder %s2178_s18, %s2174_s2 }
 0x642   :  { %p2181_p11 = por %p2180_p10, %p2179_p9 }
 0x644   :  { %p2182_p12 = pnand %p2181_p11, %p2175_p8 }
 0x6c0   :  { %v1517_v26 = vpop.xlane.xlu0 %1516 }
 0x6c1   :  { %2150 = vrcp.f32 %v1517_v26 }
 0x6cb   :  { %v2151_v27 = vpop.eup %2150 }
 0x6cc   :  { %v1519_v28 = vmul.f32 %v2151_v27, %v2149_v23 }
 0x6ce   :  { %1520 = vst.msk [vmem:[#allocation2] sm:$0x1] %vm1508_vm1, %v1519_v28 }
 0x6cf   :  { %2185 = shalt.err (!%p2182_p12)
}
 0x6d0   :  { %s2186_s10 = scalar_lea.hbm %s2837_s8, 16 }
 0x6d1   :  { %p2187_p13 = scmp.ne.s32.totalorder %s2837_s8, %s2186_s10  ;;  %p2190_p0 = scmp.lt.u32.totalorder %s2186_s10, %s2837_s8 }
 0x6d3   :  { %p2192_p1 = pnand %p2190_p0, %p2187_p13 }
 0x6d5   :  { %2195 = shalt.err (!%p2192_p1)
}
 0x6d6   :  { %1530 = dma.vmem_to_hbm [thread:$0]  %s1528_s17, 16, %s2837_s8, [#allocation3]  }
 0x6d7   :  { %2196 = dma.done.wait [#allocation3], 16  }
 0x6d8   :  { %2197 = vsyncadd [#allocation3], 4294967280 }
 0x6d9   :  { %2198 = dma.done.wait [#allocation5], 16  }
 0x6da   :  { %2199 = vsyncadd [#allocation5], 4294967280 }
 0x6db   :  { %1551 = vsyncpa [#allocation3], 1 }
 0x6dc   :  { %1552 = vsyncpa [#allocation5], 1 }

</bundles_post_ra>
